<compile_context>
chip_gen: v7x
topology: tpu7x:2x2x1
jax: 0.10.0
libtpu: 0.0.40
codegen_flags: <defaults>
</compile_context>

<pallas_src>
import math
import functools

import jax
import jax.numpy as jnp
from jax.experimental import pallas as pl
from jax.experimental.pallas import tpu as pltpu

_MXU_DTYPE = jnp.bfloat16   # matmul-operand dtype (accumulation stays f32)


# ---------------------------------------------------------------------------
# In-kernel helpers
# ---------------------------------------------------------------------------

if hasattr(pltpu, "einshape"):
    def _swap01(x):
        # (a, b, d) -> (b, a, d); lane-layout-aware sublane<->major swap.
        return pltpu.einshape("mhd->hmd", x)
else:
    def _swap01(x):
        # TODO(synk): older jax without pltpu.einshape -> plain transpose.
        return jnp.transpose(x, (1, 0, 2))


def _layer_norm(v, alpha, bias, eps):
    # torch-style custom Norm: alpha * (v - mean) / (std_unbiased + eps) + bias
    d = v.shape[-1]
    mu = jnp.mean(v, axis=-1, keepdims=True)
    var = jnp.sum((v - mu) ** 2, axis=-1, keepdims=True) * (1.0 / (d - 1))
    return alpha * (v - mu) / (jnp.sqrt(var) + eps) + bias


def _vmem_limit_bytes():
    # ~3/4 of physical VMEM, capped at 96 MiB: 48 MiB on v7x (64 MiB/TC),
    # 96 MiB on v5e/v6e (128 MiB).  Fallback is safe everywhere.
    try:
        info = pltpu.get_tpu_info()
        cap = getattr(info, "vmem_capacity_bytes", None)
        if cap:
            return int(min(cap * 3 // 4, 96 * 1024 * 1024))
    except Exception:
        pass
    return 48 * 1024 * 1024


# ---------------------------------------------------------------------------
# Fused decoder-stack kernel
#   grid = (B // Bblk, N); batch-block axis "parallel", layer axis "arbitrary".
#   The activation is carried across the (innermost) layer axis in VMEM scratch.
# ---------------------------------------------------------------------------

def _decoder_stack_kernel(x0_ref, pos_ref, mask_ref, vec_ref, b1_ref,
                          wqkvo_ref, w1_ref, w2_ref, fn_ref,
                          out_ref, x_scr, *, heads, eps):
    l = pl.program_id(1)
    Bb, S, D = x0_ref.shape
    M = Bb * S
    dk = D // heads

    # x = 图向量 + embedP(arange(S)); embedX(操作)*0 is exactly zero -> omitted.
    # Layer 0 selects the fresh init; later layers read the VMEM carry.
    x = jnp.where(l == 0,
                  (x0_ref[...] + pos_ref[...]).reshape(M, D),
                  x_scr[...])                                       # (M, D) f32

    # packed per-layer vectors: [ln1_a, ln1_b, bq*scale, bk, bv, bo, ln2_a, ln2_b, b2]
    ln1_a, ln1_b = vec_ref[0, 0], vec_ref[0, 1]
    bq, bk, bv, bo = vec_ref[0, 2], vec_ref[0, 3], vec_ref[0, 4], vec_ref[0, 5]
    ln2_a, ln2_b, b2 = vec_ref[0, 6], vec_ref[0, 7], vec_ref[0, 8]

    # ---------------- self attention (pre-norm) ----------------
    x2 = _layer_norm(x, ln1_a, ln1_b, eps)
    x2m = x2.astype(_MXU_DTYPE)
    # 1/sqrt(dk) already folded into Wq / bq in the wrapper.
    q = jnp.dot(x2m, wqkvo_ref[0, 0], preferred_element_type=jnp.float32) + bq
    k = jnp.dot(x2m, wqkvo_ref[0, 1], preferred_element_type=jnp.float32) + bk
    v = jnp.dot(x2m, wqkvo_ref[0, 2], preferred_element_type=jnp.float32) + bv

    # one lane-split reshape + one layout op per tensor (no per-head slicing)
    qh = _swap01(q.astype(_MXU_DTYPE).reshape(M, heads, dk))        # (H, M, dk)
    kh = _swap01(k.astype(_MXU_DTYPE).reshape(M, heads, dk))
    vh = _swap01(v.astype(_MXU_DTYPE).reshape(M, heads, dk))

    att_parts = []
    for b in range(Bb):                     # attention must not mix batch elements
        s0, s1 = b * S, (b + 1) * S
        qb, kb, vb = qh[:, s0:s1, :], kh[:, s0:s1, :], vh[:, s0:s1, :]
        s = jnp.einsum('hqd,hkd->hqk', qb, kb,
                       preferred_element_type=jnp.float32)          # (H, S, S)
        s = s + mask_ref[b]                 # additive bf16 mask -> f32 promote
        s = s - jnp.max(s, axis=-1, keepdims=True)
        p = jnp.exp(s)
        p = p * pl.reciprocal(jnp.sum(p, axis=-1, keepdims=True), approx=True)
        o = jnp.einsum('hqk,hkd->hqd', p.astype(_MXU_DTYPE), vb,
                       preferred_element_type=jnp.float32)          # (H, S, dk)
        att_parts.append(_swap01(o).reshape(S, D))                  # (S, D)
    attn = att_parts[0] if Bb == 1 else jnp.concatenate(att_parts, axis=0)  # (M, D)

    attn = jnp.dot(attn.astype(_MXU_DTYPE), wqkvo_ref[0, 3],
                   preferred_element_type=jnp.float32) + bo
    # TODO(synk): dropout layers are train-time stochastic ops; identity in eval mode.
    x = x + attn

    # ---------------- feed forward (pre-norm) ----------------
    x2 = _layer_norm(x, ln2_a, ln2_b, eps)
    h1 = jnp.maximum(
        jnp.dot(x2.astype(_MXU_DTYPE), w1_ref[0],
                preferred_element_type=jnp.float32) + b1_ref[0, 0], 0.0)
    ff = jnp.dot(h1.astype(_MXU_DTYPE), w2_ref[0],
                 preferred_element_type=jnp.float32) + b2
    x = x + ff

    # carry across the layer axis (layer axis is innermost / sequential by design)
    x_scr[...] = x

    @pl.when(l == pl.num_programs(1) - 1)
    def _():
        y = _layer_norm(x, fn_ref[0], fn_ref[1], eps)
        out_ref[...] = y.reshape(Bb, S, D)


# ---------------------------------------------------------------------------
# Wrapper
# ---------------------------------------------------------------------------

def decoder_forward(tu_xiangliang, caozuo, trg_mask, params, heads,
                    eps=1e-6, block_b=None):
    """图向量: (B,S,D) f32; 操作: (B,S) int32 (unused: embedX*0); trg_mask: (B,S,S)."""
    del caozuo  # embedX(操作) * 0 contributes exactly zero; gather + DMA dropped.
    B, S, D = tu_xiangliang.shape
    N = params["wq"].shape[0]
    d_ff = params["w1"].shape[-1]
    assert D % heads == 0
    if block_b is None:
        # keep >=2 blocks on the parallel axis (megacore) while batching rows
        block_b = B // 2 if (B % 2 == 0 and B >= 2) else B
    assert B % block_b == 0

    dk = D // heads
    scale = 1.0 / math.sqrt(dk)

    pos_emb = params["embedP"][:S]                                  # (S, D) static slice (glue)
    add_mask = jnp.where(trg_mask == 0, -1e9, 0.0).astype(jnp.bfloat16)   # (B,S,S)

    # big weights -> bf16 once in the wrapper; fold 1/sqrt(dk) into Wq.
    wq = (params["wq"] * scale).astype(jnp.bfloat16)
    wk = params["wk"].astype(jnp.bfloat16)
    wv = params["wv"].astype(jnp.bfloat16)
    wo = params["wo"].astype(jnp.bfloat16)
    wqkvo = jnp.stack([wq, wk, wv, wo], axis=1)                     # (N, 4, D, D) bf16
    w1 = params["w1"].astype(jnp.bfloat16)                          # (N, D, d_ff)
    w2 = params["w2"].astype(jnp.bfloat16)                          # (N, d_ff, D)

    # pack the per-layer D-vectors into one slab (order matches kernel indices)
    vec_slab = jnp.concatenate(
        [params["ln1_a"], params["ln1_b"],
         params["bq"] * scale, params["bk"], params["bv"], params["bo"],
         params["ln2_a"], params["ln2_b"], params["b2"]],
        axis=1).astype(jnp.float32)                                  # (N, 9, D)
    b1_slab = params["b1"].astype(jnp.float32)                       # (N, 1, d_ff)
    fnorm = jnp.concatenate([params["norm_a"], params["norm_b"]], axis=0)  # (2, D)

    kernel = functools.partial(_decoder_stack_kernel, heads=heads, eps=eps)

    bmap3 = lambda bb, l: (bb, 0, 0)      # per-batch-block, constant across layers
    lmap3 = lambda bb, l: (l, 0, 0)       # per-layer slabs, streamed by the layer axis
    lmap4 = lambda bb, l: (l, 0, 0, 0)
    cmap2 = lambda bb, l: (0, 0)          # fully-resident small constants

    in_specs = [
        pl.BlockSpec((block_b, S, D), bmap3),     # x0 = 图向量
        pl.BlockSpec((S, D), cmap2),              # positional embedding
        pl.BlockSpec((block_b, S, S), bmap3),     # additive bf16 mask
        pl.BlockSpec((1, 9, D), lmap3),           # packed per-layer D-vectors
        pl.BlockSpec((1, 1, d_ff), lmap3),        # b1
        pl.BlockSpec((1, 4, D, D), lmap4),        # Wq|Wk|Wv|Wo (bf16)
        pl.BlockSpec((1, D, d_ff), lmap3),        # W1 (bf16)
        pl.BlockSpec((1, d_ff, D), lmap3),        # W2 (bf16)
        pl.BlockSpec((2, D), cmap2),              # final norm alpha/bias
    ]

    return pl.pallas_call(
        kernel,
        out_shape=jax.ShapeDtypeStruct((B, S, D), jnp.float32),
        grid=(B // block_b, N),
        in_specs=in_specs,
        out_specs=pl.BlockSpec((block_b, S, D), bmap3),
        scratch_shapes=[pltpu.VMEM((block_b * S, D), jnp.float32)],   # carried activation
        compiler_params=pltpu.CompilerParams(
            dimension_semantics=("parallel", "arbitrary"),
            vmem_limit_bytes=_vmem_limit_bytes()),
    )(tu_xiangliang, pos_emb, add_mask, vec_slab, b1_slab, wqkvo, w1, w2, fnorm)


# ---------------------------------------------------------------------------
# Parameter init (per-layer weights stacked on a leading layer axis)
# ---------------------------------------------------------------------------

def init_params(key, vocab_size, max_len, d_model, d_ff, N):
    ks = jax.random.split(key, 10)
    return {
        "embedX": 0.02 * jax.random.normal(ks[0], (vocab_size, d_model), jnp.float32),
        "embedP": 0.02 * jax.random.normal(ks[1], (max_len, d_model), jnp.float32),
        "norm_a": jnp.ones((1, d_model), jnp.float32),
        "norm_b": jnp.zeros((1, d_model), jnp.float32),
        "ln1_a": jnp.ones((N, 1, d_model), jnp.float32),
        "ln1_b": jnp.zeros((N, 1, d_model), jnp.float32),
        "wq": 0.05 * jax.random.normal(ks[2], (N, d_model, d_model), jnp.float32),
        "bq": 0.01 * jax.random.normal(ks[3], (N, 1, d_model), jnp.float32),
        "wk": 0.05 * jax.random.normal(ks[4], (N, d_model, d_model), jnp.float32),
        "bk": jnp.zeros((N, 1, d_model), jnp.float32),
        "wv": 0.05 * jax.random.normal(ks[5], (N, d_model, d_model), jnp.float32),
        "bv": jnp.zeros((N, 1, d_model), jnp.float32),
        "wo": 0.05 * jax.random.normal(ks[6], (N, d_model, d_model), jnp.float32),
        "bo": jnp.zeros((N, 1, d_model), jnp.float32),
        "ln2_a": jnp.ones((N, 1, d_model), jnp.float32),
        "ln2_b": jnp.zeros((N, 1, d_model), jnp.float32),
        "w1": 0.05 * jax.random.normal(ks[7], (N, d_model, d_ff), jnp.float32),
        "b1": 0.01 * jax.random.normal(ks[8], (N, 1, d_ff), jnp.float32),
        "w2": 0.05 * jax.random.normal(ks[9], (N, d_ff, d_model), jnp.float32),
        "b2": jnp.zeros((N, 1, d_model), jnp.float32),
    }


# ---------------------------------------------------------------------------
if __name__ == "__main__":
    B, S, D = 4, 8, 32          # batch, seq, d_model
    heads, N, d_ff = 4, 2, 64
    vocab_size, max_len = 50, 1024

    key = jax.random.PRNGKey(0)
    k_par, k_img, k_tok = jax.random.split(key, 3)

    params = init_params(k_par, vocab_size, max_len, D, d_ff, N)

    tu_xiangliang = jax.random.normal(k_img, (B, S, D), jnp.float32)        # 图向量
    caozuo = jax.random.randint(k_tok, (B, S), 0, vocab_size, jnp.int32)    # 操作 (dead: *0)
    trg_mask = jnp.tril(jnp.ones((S, S), jnp.int32))[None].repeat(B, axis=0)  # (B,S,S)

    fwd = jax.jit(functools.partial(decoder_forward, heads=heads))
    out = fwd(tu_xiangliang, caozuo, trg_mask, params)
    jax.block_until_ready(out)
    assert out.shape == (B, S, D) and out.dtype == jnp.float32
    print("KERNEL_OK")
</pallas_src>

<mosaic_0001>
module attributes {stable_mosaic.version = 11 : i64} {
  func.func @_decoder_stack_kernel(%arg0: i32, %arg1: i32, %arg2: memref<2x8x32xf32, #tpu.memory_space<vmem>>, %arg3: memref<8x32xf32, #tpu.memory_space<vmem>>, %arg4: memref<2x8x8xbf16, #tpu.memory_space<vmem>>, %arg5: memref<1x9x32xf32, #tpu.memory_space<vmem>>, %arg6: memref<1x1x64xf32, #tpu.memory_space<vmem>>, %arg7: memref<1x4x32x32xbf16, #tpu.memory_space<vmem>>, %arg8: memref<1x32x64xbf16, #tpu.memory_space<vmem>>, %arg9: memref<1x64x32xbf16, #tpu.memory_space<vmem>>, %arg10: memref<2x32xf32, #tpu.memory_space<vmem>>, %arg11: memref<2x8x32xf32, #tpu.memory_space<vmem>>, %arg12: memref<16x32xf32, #tpu.memory_space<vmem>>) attributes {dimension_semantics = [#tpu.dimension_semantics<parallel>, #tpu.dimension_semantics<arbitrary>], iteration_bounds = array<i64: 2, 2>, scalar_prefetch = 0 : i64, scratch_operands = 1 : i64, tpu.core_type = #tpu.core_type<tc>, window_params = [{transform_indices = @transform_0, window_bounds = array<i64: 2, 8, 32>}, {pipeline_mode = #tpu.pipeline_mode<synchronous>, transform_indices = @transform_1, window_bounds = array<i64: 8, 32>}, {transform_indices = @transform_2, window_bounds = array<i64: 2, 8, 8>}, {transform_indices = @transform_3, window_bounds = array<i64: 1, 9, 32>}, {transform_indices = @transform_4, window_bounds = array<i64: 1, 1, 64>}, {transform_indices = @transform_5, window_bounds = array<i64: 1, 4, 32, 32>}, {transform_indices = @transform_6, window_bounds = array<i64: 1, 32, 64>}, {transform_indices = @transform_7, window_bounds = array<i64: 1, 64, 32>}, {pipeline_mode = #tpu.pipeline_mode<synchronous>, transform_indices = @transform_8, window_bounds = array<i64: 2, 32>}, {transform_indices = @transform_9, window_bounds = array<i64: 2, 8, 32>}]} {
    %c0_i32 = arith.constant 0 : i32
    %0 = arith.cmpi eq, %arg1, %c0_i32 : i32
    %c0 = arith.constant 0 : index
    %c0_0 = arith.constant 0 : index
    %c0_1 = arith.constant 0 : index
    %1 = vector.load %arg2[%c0, %c0_0, %c0_1] : memref<2x8x32xf32, #tpu.memory_space<vmem>>, vector<2x8x32xf32>
    %c0_2 = arith.constant 0 : index
    %c0_3 = arith.constant 0 : index
    %2 = vector.load %arg3[%c0_2, %c0_3] : memref<8x32xf32, #tpu.memory_space<vmem>>, vector<8x32xf32>
    %3 = vector.shape_cast %2 : vector<8x32xf32> to vector<1x8x32xf32>
    %4 = vector.broadcast %3 : vector<1x8x32xf32> to vector<2x8x32xf32>
    %5 = arith.addf %1, %4 : vector<2x8x32xf32>
    %6 = vector.shape_cast %5 : vector<2x8x32xf32> to vector<16x32xf32>
    %c0_4 = arith.constant 0 : index
    %c0_5 = arith.constant 0 : index
    %7 = vector.load %arg12[%c0_4, %c0_5] : memref<16x32xf32, #tpu.memory_space<vmem>>, vector<16x32xf32>
    %8 = arith.select %0, %6, %7 : vector<16x32xf32>
    %c0_6 = arith.constant 0 : index
    %c0_7 = arith.constant 0 : index
    %c0_8 = arith.constant 0 : index
    %9 = vector.load %arg5[%c0_6, %c0_7, %c0_8] : memref<1x9x32xf32, #tpu.memory_space<vmem>>, vector<1x1x32xf32>
    %10 = vector.shape_cast %9 : vector<1x1x32xf32> to vector<32xf32>
    %c0_9 = arith.constant 0 : index
    %c1 = arith.constant 1 : index
    %c0_10 = arith.constant 0 : index
    %11 = vector.load %arg5[%c0_9, %c1, %c0_10] : memref<1x9x32xf32, #tpu.memory_space<vmem>>, vector<1x1x32xf32>
    %12 = vector.shape_cast %11 : vector<1x1x32xf32> to vector<32xf32>
    %c0_11 = arith.constant 0 : index
    %c2 = arith.constant 2 : index
    %c0_12 = arith.constant 0 : index
    %13 = vector.load %arg5[%c0_11, %c2, %c0_12] : memref<1x9x32xf32, #tpu.memory_space<vmem>>, vector<1x1x32xf32>
    %14 = vector.shape_cast %13 : vector<1x1x32xf32> to vector<32xf32>
    %c0_13 = arith.constant 0 : index
    %c3 = arith.constant 3 : index
    %c0_14 = arith.constant 0 : index
    %15 = vector.load %arg5[%c0_13, %c3, %c0_14] : memref<1x9x32xf32, #tpu.memory_space<vmem>>, vector<1x1x32xf32>
    %16 = vector.shape_cast %15 : vector<1x1x32xf32> to vector<32xf32>
    %c0_15 = arith.constant 0 : index
    %c4 = arith.constant 4 : index
    %c0_16 = arith.constant 0 : index
    %17 = vector.load %arg5[%c0_15, %c4, %c0_16] : memref<1x9x32xf32, #tpu.memory_space<vmem>>, vector<1x1x32xf32>
    %18 = vector.shape_cast %17 : vector<1x1x32xf32> to vector<32xf32>
    %c0_17 = arith.constant 0 : index
    %c5 = arith.constant 5 : index
    %c0_18 = arith.constant 0 : index
    %19 = vector.load %arg5[%c0_17, %c5, %c0_18] : memref<1x9x32xf32, #tpu.memory_space<vmem>>, vector<1x1x32xf32>
    %20 = vector.shape_cast %19 : vector<1x1x32xf32> to vector<32xf32>
    %c0_19 = arith.constant 0 : index
    %c6 = arith.constant 6 : index
    %c0_20 = arith.constant 0 : index
    %21 = vector.load %arg5[%c0_19, %c6, %c0_20] : memref<1x9x32xf32, #tpu.memory_space<vmem>>, vector<1x1x32xf32>
    %22 = vector.shape_cast %21 : vector<1x1x32xf32> to vector<32xf32>
    %c0_21 = arith.constant 0 : index
    %c7 = arith.constant 7 : index
    %c0_22 = arith.constant 0 : index
    %23 = vector.load %arg5[%c0_21, %c7, %c0_22] : memref<1x9x32xf32, #tpu.memory_space<vmem>>, vector<1x1x32xf32>
    %24 = vector.shape_cast %23 : vector<1x1x32xf32> to vector<32xf32>
    %c0_23 = arith.constant 0 : index
    %c8 = arith.constant 8 : index
    %c0_24 = arith.constant 0 : index
    %25 = vector.load %arg5[%c0_23, %c8, %c0_24] : memref<1x9x32xf32, #tpu.memory_space<vmem>>, vector<1x1x32xf32>
    %26 = vector.shape_cast %25 : vector<1x1x32xf32> to vector<32xf32>
    %cst = arith.constant dense<0.000000e+00> : vector<16xf32>
    %27 = vector.multi_reduction <add>, %8, %cst [1] : vector<16x32xf32> to vector<16xf32>
    %28 = vector.shape_cast %27 : vector<16xf32> to vector<16x1xf32>
    %cst_25 = arith.constant 3.200000e+01 : f32
    %29 = vector.broadcast %cst_25 : f32 to vector<16x1xf32>
    %30 = arith.divf %28, %29 : vector<16x1xf32>
    %31 = vector.broadcast %30 : vector<16x1xf32> to vector<16x32xf32>
    %32 = arith.subf %8, %31 : vector<16x32xf32>
    %33 = arith.mulf %32, %32 : vector<16x32xf32>
    %cst_26 = arith.constant dense<0.000000e+00> : vector<16xf32>
    %34 = vector.multi_reduction <add>, %33, %cst_26 [1] : vector<16x32xf32> to vector<16xf32>
    %35 = vector.shape_cast %34 : vector<16xf32> to vector<16x1xf32>
    %cst_27 = arith.constant 0.0322580636 : f32
    %36 = vector.broadcast %cst_27 : f32 to vector<16x1xf32>
    %37 = arith.mulf %35, %36 : vector<16x1xf32>
    %38 = vector.broadcast %30 : vector<16x1xf32> to vector<16x32xf32>
    %39 = arith.subf %8, %38 : vector<16x32xf32>
    %40 = vector.shape_cast %10 : vector<32xf32> to vector<1x32xf32>
    %41 = vector.broadcast %40 : vector<1x32xf32> to vector<16x32xf32>
    %42 = arith.mulf %41, %39 : vector<16x32xf32>
    %43 = math.sqrt %37 : vector<16x1xf32>
    %cst_28 = arith.constant 9.99999997E-7 : f32
    %44 = vector.broadcast %cst_28 : f32 to vector<16x1xf32>
    %45 = arith.addf %43, %44 : vector<16x1xf32>
    %46 = vector.broadcast %45 : vector<16x1xf32> to vector<16x32xf32>
    %47 = arith.divf %42, %46 : vector<16x32xf32>
    %48 = vector.shape_cast %12 : vector<32xf32> to vector<1x32xf32>
    %49 = vector.broadcast %48 : vector<1x32xf32> to vector<16x32xf32>
    %50 = arith.addf %47, %49 : vector<16x32xf32>
    %51 = arith.truncf %50 : vector<16x32xf32> to vector<16x32xbf16>
    %c0_29 = arith.constant 0 : index
    %c0_30 = arith.constant 0 : index
    %c0_31 = arith.constant 0 : index
    %c0_32 = arith.constant 0 : index
    %52 = vector.load %arg7[%c0_29, %c0_30, %c0_31, %c0_32] : memref<1x4x32x32xbf16, #tpu.memory_space<vmem>>, vector<1x1x32x32xbf16>
    %53 = vector.shape_cast %52 : vector<1x1x32x32xbf16> to vector<32x32xbf16>
    %cst_33 = arith.constant dense<0.000000e+00> : vector<16x32xf32>
    %54 = tpu.matmul %51, %53, %cst_33 {dimension_numbers = #tpu.dot_dimension_numbers<[1], [0], [0], [1], [0, 0, 1, 1], [], []>} : vector<16x32xbf16>, vector<32x32xbf16>, vector<16x32xf32> -> vector<16x32xf32>
    %55 = vector.shape_cast %14 : vector<32xf32> to vector<1x32xf32>
    %56 = vector.broadcast %55 : vector<1x32xf32> to vector<16x32xf32>
    %57 = arith.addf %54, %56 : vector<16x32xf32>
    %c0_34 = arith.constant 0 : index
    %c1_35 = arith.constant 1 : index
    %c0_36 = arith.constant 0 : index
    %c0_37 = arith.constant 0 : index
    %58 = vector.load %arg7[%c0_34, %c1_35, %c0_36, %c0_37] : memref<1x4x32x32xbf16, #tpu.memory_space<vmem>>, vector<1x1x32x32xbf16>
    %59 = vector.shape_cast %58 : vector<1x1x32x32xbf16> to vector<32x32xbf16>
    %cst_38 = arith.constant dense<0.000000e+00> : vector<16x32xf32>
    %60 = tpu.matmul %51, %59, %cst_38 {dimension_numbers = #tpu.dot_dimension_numbers<[1], [0], [0], [1], [0, 0, 1, 1], [], []>} : vector<16x32xbf16>, vector<32x32xbf16>, vector<16x32xf32> -> vector<16x32xf32>
    %61 = vector.shape_cast %16 : vector<32xf32> to vector<1x32xf32>
    %62 = vector.broadcast %61 : vector<1x32xf32> to vector<16x32xf32>
    %63 = arith.addf %60, %62 : vector<16x32xf32>
    %c0_39 = arith.constant 0 : index
    %c2_40 = arith.constant 2 : index
    %c0_41 = arith.constant 0 : index
    %c0_42 = arith.constant 0 : index
    %64 = vector.load %arg7[%c0_39, %c2_40, %c0_41, %c0_42] : memref<1x4x32x32xbf16, #tpu.memory_space<vmem>>, vector<1x1x32x32xbf16>
    %65 = vector.shape_cast %64 : vector<1x1x32x32xbf16> to vector<32x32xbf16>
    %cst_43 = arith.constant dense<0.000000e+00> : vector<16x32xf32>
    %66 = tpu.matmul %51, %65, %cst_43 {dimension_numbers = #tpu.dot_dimension_numbers<[1], [0], [0], [1], [0, 0, 1, 1], [], []>} : vector<16x32xbf16>, vector<32x32xbf16>, vector<16x32xf32> -> vector<16x32xf32>
    %67 = vector.shape_cast %18 : vector<32xf32> to vector<1x32xf32>
    %68 = vector.broadcast %67 : vector<1x32xf32> to vector<16x32xf32>
    %69 = arith.addf %66, %68 : vector<16x32xf32>
    %70 = arith.truncf %57 : vector<16x32xf32> to vector<16x32xbf16>
    %71 = vector.shape_cast %70 : vector<16x32xbf16> to vector<16x4x8xbf16>
    %72 = tpu.transpose %71, [1, 0, 2] : vector<16x4x8xbf16> -> vector<4x16x8xbf16>
    %73 = arith.truncf %63 : vector<16x32xf32> to vector<16x32xbf16>
    %74 = vector.shape_cast %73 : vector<16x32xbf16> to vector<16x4x8xbf16>
    %75 = tpu.transpose %74, [1, 0, 2] : vector<16x4x8xbf16> -> vector<4x16x8xbf16>
    %76 = arith.truncf %69 : vector<16x32xf32> to vector<16x32xbf16>
    %77 = vector.shape_cast %76 : vector<16x32xbf16> to vector<16x4x8xbf16>
    %78 = tpu.transpose %77, [1, 0, 2] : vector<16x4x8xbf16> -> vector<4x16x8xbf16>
    %79 = vector.extract_strided_slice %72 {offsets = [0, 0, 0], sizes = [4, 8, 8], strides = [1, 1, 1]} : vector<4x16x8xbf16> to vector<4x8x8xbf16>
    %80 = vector.extract_strided_slice %75 {offsets = [0, 0, 0], sizes = [4, 8, 8], strides = [1, 1, 1]} : vector<4x16x8xbf16> to vector<4x8x8xbf16>
    %81 = vector.extract_strided_slice %78 {offsets = [0, 0, 0], sizes = [4, 8, 8], strides = [1, 1, 1]} : vector<4x16x8xbf16> to vector<4x8x8xbf16>
    "tpu.trace_start"() <{level = 10 : i32, message = "hqd,hkd->hqk"}> : () -> ()
    %cst_44 = arith.constant dense<0.000000e+00> : vector<4x8x8xf32>
    %82 = tpu.matmul %79, %80, %cst_44 {dimension_numbers = #tpu.dot_dimension_numbers<[2], [2], [1], [1], [0, 0, 0, 1, 1, 1], [0], [0]>} : vector<4x8x8xbf16>, vector<4x8x8xbf16>, vector<4x8x8xf32> -> vector<4x8x8xf32>
    "tpu.trace_stop"() : () -> ()
    %c0_45 = arith.constant 0 : index
    %c0_46 = arith.constant 0 : index
    %c0_47 = arith.constant 0 : index
    %83 = vector.load %arg4[%c0_45, %c0_46, %c0_47] : memref<2x8x8xbf16, #tpu.memory_space<vmem>>, vector<1x8x8xbf16>
    %84 = vector.shape_cast %83 : vector<1x8x8xbf16> to vector<8x8xbf16>
    %85 = arith.extf %84 : vector<8x8xbf16> to vector<8x8xf32>
    %86 = vector.shape_cast %85 : vector<8x8xf32> to vector<1x8x8xf32>
    %87 = vector.broadcast %86 : vector<1x8x8xf32> to vector<4x8x8xf32>
    %88 = arith.addf %82, %87 : vector<4x8x8xf32>
    %cst_48 = arith.constant dense<0xFF800000> : vector<4x8xf32>
    %89 = vector.multi_reduction <maximumf>, %88, %cst_48 [2] : vector<4x8x8xf32> to vector<4x8xf32>
    %90 = vector.shape_cast %89 : vector<4x8xf32> to vector<4x8x1xf32>
    %91 = vector.broadcast %90 : vector<4x8x1xf32> to vector<4x8x8xf32>
    %92 = arith.subf %88, %91 : vector<4x8x8xf32>
    %93 = math.exp %92 : vector<4x8x8xf32>
    %cst_49 = arith.constant dense<0.000000e+00> : vector<4x8xf32>
    %94 = vector.multi_reduction <add>, %93, %cst_49 [2] : vector<4x8x8xf32> to vector<4x8xf32>
    %95 = vector.shape_cast %94 : vector<4x8xf32> to vector<4x8x1xf32>
    %96 = tpu.reciprocal %95 {approx = true} : vector<4x8x1xf32> -> vector<4x8x1xf32>
    %97 = vector.broadcast %96 : vector<4x8x1xf32> to vector<4x8x8xf32>
    %98 = arith.mulf %93, %97 : vector<4x8x8xf32>
    %99 = arith.truncf %98 : vector<4x8x8xf32> to vector<4x8x8xbf16>
    "tpu.trace_start"() <{level = 10 : i32, message = "hqk,hkd->hqd"}> : () -> ()
    %cst_50 = arith.constant dense<0.000000e+00> : vector<4x8x8xf32>
    %100 = tpu.matmul %99, %81, %cst_50 {dimension_numbers = #tpu.dot_dimension_numbers<[2], [1], [1], [2], [0, 0, 0, 1, 1, 2], [0], [0]>} : vector<4x8x8xbf16>, vector<4x8x8xbf16>, vector<4x8x8xf32> -> vector<4x8x8xf32>
    "tpu.trace_stop"() : () -> ()
    %101 = tpu.transpose %100, [1, 0, 2] : vector<4x8x8xf32> -> vector<8x4x8xf32>
    %102 = vector.shape_cast %101 : vector<8x4x8xf32> to vector<8x32xf32>
    %103 = vector.extract_strided_slice %72 {offsets = [0, 8, 0], sizes = [4, 8, 8], strides = [1, 1, 1]} : vector<4x16x8xbf16> to vector<4x8x8xbf16>
    %104 = vector.extract_strided_slice %75 {offsets = [0, 8, 0], sizes = [4, 8, 8], strides = [1, 1, 1]} : vector<4x16x8xbf16> to vector<4x8x8xbf16>
    %105 = vector.extract_strided_slice %78 {offsets = [0, 8, 0], sizes = [4, 8, 8], strides = [1, 1, 1]} : vector<4x16x8xbf16> to vector<4x8x8xbf16>
    "tpu.trace_start"() <{level = 10 : i32, message = "hqd,hkd->hqk"}> : () -> ()
    %cst_51 = arith.constant dense<0.000000e+00> : vector<4x8x8xf32>
    %106 = tpu.matmul %103, %104, %cst_51 {dimension_numbers = #tpu.dot_dimension_numbers<[2], [2], [1], [1], [0, 0, 0, 1, 1, 1], [0], [0]>} : vector<4x8x8xbf16>, vector<4x8x8xbf16>, vector<4x8x8xf32> -> vector<4x8x8xf32>
    "tpu.trace_stop"() : () -> ()
    %c1_52 = arith.constant 1 : index
    %c0_53 = arith.constant 0 : index
    %c0_54 = arith.constant 0 : index
    %107 = vector.load %arg4[%c1_52, %c0_53, %c0_54] : memref<2x8x8xbf16, #tpu.memory_space<vmem>>, vector<1x8x8xbf16>
    %108 = vector.shape_cast %107 : vector<1x8x8xbf16> to vector<8x8xbf16>
    %109 = arith.extf %108 : vector<8x8xbf16> to vector<8x8xf32>
    %110 = vector.shape_cast %109 : vector<8x8xf32> to vector<1x8x8xf32>
    %111 = vector.broadcast %110 : vector<1x8x8xf32> to vector<4x8x8xf32>
    %112 = arith.addf %106, %111 : vector<4x8x8xf32>
    %cst_55 = arith.constant dense<0xFF800000> : vector<4x8xf32>
    %113 = vector.multi_reduction <maximumf>, %112, %cst_55 [2] : vector<4x8x8xf32> to vector<4x8xf32>
    %114 = vector.shape_cast %113 : vector<4x8xf32> to vector<4x8x1xf32>
    %115 = vector.broadcast %114 : vector<4x8x1xf32> to vector<4x8x8xf32>
    %116 = arith.subf %112, %115 : vector<4x8x8xf32>
    %117 = math.exp %116 : vector<4x8x8xf32>
    %cst_56 = arith.constant dense<0.000000e+00> : vector<4x8xf32>
    %118 = vector.multi_reduction <add>, %117, %cst_56 [2] : vector<4x8x8xf32> to vector<4x8xf32>
    %119 = vector.shape_cast %118 : vector<4x8xf32> to vector<4x8x1xf32>
    %120 = tpu.reciprocal %119 {approx = true} : vector<4x8x1xf32> -> vector<4x8x1xf32>
    %121 = vector.broadcast %120 : vector<4x8x1xf32> to vector<4x8x8xf32>
    %122 = arith.mulf %117, %121 : vector<4x8x8xf32>
    %123 = arith.truncf %122 : vector<4x8x8xf32> to vector<4x8x8xbf16>
    "tpu.trace_start"() <{level = 10 : i32, message = "hqk,hkd->hqd"}> : () -> ()
    %cst_57 = arith.constant dense<0.000000e+00> : vector<4x8x8xf32>
    %124 = tpu.matmul %123, %105, %cst_57 {dimension_numbers = #tpu.dot_dimension_numbers<[2], [1], [1], [2], [0, 0, 0, 1, 1, 2], [0], [0]>} : vector<4x8x8xbf16>, vector<4x8x8xbf16>, vector<4x8x8xf32> -> vector<4x8x8xf32>
    "tpu.trace_stop"() : () -> ()
    %125 = tpu.transpose %124, [1, 0, 2] : vector<4x8x8xf32> -> vector<8x4x8xf32>
    %126 = vector.shape_cast %125 : vector<8x4x8xf32> to vector<8x32xf32>
    %127 = tpu.concatenate %102, %126 in 0 : vector<8x32xf32>, vector<8x32xf32> -> vector<16x32xf32>
    %128 = arith.truncf %127 : vector<16x32xf32> to vector<16x32xbf16>
    %c0_58 = arith.constant 0 : index
    %c3_59 = arith.constant 3 : index
    %c0_60 = arith.constant 0 : index
    %c0_61 = arith.constant 0 : index
    %129 = vector.load %arg7[%c0_58, %c3_59, %c0_60, %c0_61] : memref<1x4x32x32xbf16, #tpu.memory_space<vmem>>, vector<1x1x32x32xbf16>
    %130 = vector.shape_cast %129 : vector<1x1x32x32xbf16> to vector<32x32xbf16>
    %cst_62 = arith.constant dense<0.000000e+00> : vector<16x32xf32>
    %131 = tpu.matmul %128, %130, %cst_62 {dimension_numbers = #tpu.dot_dimension_numbers<[1], [0], [0], [1], [0, 0, 1, 1], [], []>} : vector<16x32xbf16>, vector<32x32xbf16>, vector<16x32xf32> -> vector<16x32xf32>
    %132 = vector.shape_cast %20 : vector<32xf32> to vector<1x32xf32>
    %133 = vector.broadcast %132 : vector<1x32xf32> to vector<16x32xf32>
    %134 = arith.addf %131, %133 : vector<16x32xf32>
    %135 = arith.addf %8, %134 : vector<16x32xf32>
    %cst_63 = arith.constant dense<0.000000e+00> : vector<16xf32>
    %136 = vector.multi_reduction <add>, %135, %cst_63 [1] : vector<16x32xf32> to vector<16xf32>
    %137 = vector.shape_cast %136 : vector<16xf32> to vector<16x1xf32>
    %cst_64 = arith.constant 3.200000e+01 : f32
    %138 = vector.broadcast %cst_64 : f32 to vector<16x1xf32>
    %139 = arith.divf %137, %138 : vector<16x1xf32>
    %140 = vector.broadcast %139 : vector<16x1xf32> to vector<16x32xf32>
    %141 = arith.subf %135, %140 : vector<16x32xf32>
    %142 = arith.mulf %141, %141 : vector<16x32xf32>
    %cst_65 = arith.constant dense<0.000000e+00> : vector<16xf32>
    %143 = vector.multi_reduction <add>, %142, %cst_65 [1] : vector<16x32xf32> to vector<16xf32>
    %144 = vector.shape_cast %143 : vector<16xf32> to vector<16x1xf32>
    %cst_66 = arith.constant 0.0322580636 : f32
    %145 = vector.broadcast %cst_66 : f32 to vector<16x1xf32>
    %146 = arith.mulf %144, %145 : vector<16x1xf32>
    %147 = vector.broadcast %139 : vector<16x1xf32> to vector<16x32xf32>
    %148 = arith.subf %135, %147 : vector<16x32xf32>
    %149 = vector.shape_cast %22 : vector<32xf32> to vector<1x32xf32>
    %150 = vector.broadcast %149 : vector<1x32xf32> to vector<16x32xf32>
    %151 = arith.mulf %150, %148 : vector<16x32xf32>
    %152 = math.sqrt %146 : vector<16x1xf32>
    %cst_67 = arith.constant 9.99999997E-7 : f32
    %153 = vector.broadcast %cst_67 : f32 to vector<16x1xf32>
    %154 = arith.addf %152, %153 : vector<16x1xf32>
    %155 = vector.broadcast %154 : vector<16x1xf32> to vector<16x32xf32>
    %156 = arith.divf %151, %155 : vector<16x32xf32>
    %157 = vector.shape_cast %24 : vector<32xf32> to vector<1x32xf32>
    %158 = vector.broadcast %157 : vector<1x32xf32> to vector<16x32xf32>
    %159 = arith.addf %156, %158 : vector<16x32xf32>
    %160 = arith.truncf %159 : vector<16x32xf32> to vector<16x32xbf16>
    %c0_68 = arith.constant 0 : index
    %c0_69 = arith.constant 0 : index
    %c0_70 = arith.constant 0 : index
    %161 = vector.load %arg8[%c0_68, %c0_69, %c0_70] : memref<1x32x64xbf16, #tpu.memory_space<vmem>>, vector<1x32x64xbf16>
    %162 = vector.shape_cast %161 : vector<1x32x64xbf16> to vector<32x64xbf16>
    %cst_71 = arith.constant dense<0.000000e+00> : vector<16x64xf32>
    %163 = tpu.matmul %160, %162, %cst_71 {dimension_numbers = #tpu.dot_dimension_numbers<[1], [0], [0], [1], [0, 0, 1, 1], [], []>} : vector<16x32xbf16>, vector<32x64xbf16>, vector<16x64xf32> -> vector<16x64xf32>
    %c0_72 = arith.constant 0 : index
    %c0_73 = arith.constant 0 : index
    %c0_74 = arith.constant 0 : index
    %164 = vector.load %arg6[%c0_72, %c0_73, %c0_74] : memref<1x1x64xf32, #tpu.memory_space<vmem>>, vector<1x1x64xf32>
    %165 = vector.shape_cast %164 : vector<1x1x64xf32> to vector<64xf32>
    %166 = vector.shape_cast %165 : vector<64xf32> to vector<1x64xf32>
    %167 = vector.broadcast %166 : vector<1x64xf32> to vector<16x64xf32>
    %168 = arith.addf %163, %167 : vector<16x64xf32>
    %cst_75 = arith.constant 0.000000e+00 : f32
    %169 = vector.broadcast %cst_75 : f32 to vector<16x64xf32>
    %170 = arith.maximumf %168, %169 : vector<16x64xf32>
    %171 = arith.truncf %170 : vector<16x64xf32> to vector<16x64xbf16>
    %c0_76 = arith.constant 0 : index
    %c0_77 = arith.constant 0 : index
    %c0_78 = arith.constant 0 : index
    %172 = vector.load %arg9[%c0_76, %c0_77, %c0_78] : memref<1x64x32xbf16, #tpu.memory_space<vmem>>, vector<1x64x32xbf16>
    %173 = vector.shape_cast %172 : vector<1x64x32xbf16> to vector<64x32xbf16>
    %cst_79 = arith.constant dense<0.000000e+00> : vector<16x32xf32>
    %174 = tpu.matmul %171, %173, %cst_79 {dimension_numbers = #tpu.dot_dimension_numbers<[1], [0], [0], [1], [0, 0, 1, 1], [], []>} : vector<16x64xbf16>, vector<64x32xbf16>, vector<16x32xf32> -> vector<16x32xf32>
    %175 = vector.shape_cast %26 : vector<32xf32> to vector<1x32xf32>
    %176 = vector.broadcast %175 : vector<1x32xf32> to vector<16x32xf32>
    %177 = arith.addf %174, %176 : vector<16x32xf32>
    %178 = arith.addf %135, %177 : vector<16x32xf32>
    %c0_80 = arith.constant 0 : index
    %c0_81 = arith.constant 0 : index
    %179 = vector.load %arg12[%c0_80, %c0_81] : memref<16x32xf32, #tpu.memory_space<vmem>>, vector<16x32xf32>
    tpu.vector_store %arg12[%c0_80, %c0_81], %178 {strides = array<i32>} : memref<16x32xf32, #tpu.memory_space<vmem>>, vector<16x32xf32>,
    %c1_i32 = arith.constant 1 : i32
    %180 = arith.cmpi eq, %arg1, %c1_i32 : i32
    %181 = arith.extui %180 : i1 to i32
    %c0_i32_82 = arith.constant 0 : i32
    %182 = arith.cmpi ne, %181, %c0_i32_82 : i32
    scf.if %182 {
      %c0_83 = arith.constant 0 : index
      %c0_84 = arith.constant 0 : index
      %183 = vector.load %arg10[%c0_83, %c0_84] : memref<2x32xf32, #tpu.memory_space<vmem>>, vector<1x32xf32>
      %184 = vector.shape_cast %183 : vector<1x32xf32> to vector<32xf32>
      %c1_85 = arith.constant 1 : index
      %c0_86 = arith.constant 0 : index
      %185 = vector.load %arg10[%c1_85, %c0_86] : memref<2x32xf32, #tpu.memory_space<vmem>>, vector<1x32xf32>
      %186 = vector.shape_cast %185 : vector<1x32xf32> to vector<32xf32>
      %cst_87 = arith.constant dense<0.000000e+00> : vector<16xf32>
      %187 = vector.multi_reduction <add>, %178, %cst_87 [1] : vector<16x32xf32> to vector<16xf32>
      %188 = vector.shape_cast %187 : vector<16xf32> to vector<16x1xf32>
      %cst_88 = arith.constant 3.200000e+01 : f32
      %189 = vector.broadcast %cst_88 : f32 to vector<16x1xf32>
      %190 = arith.divf %188, %189 : vector<16x1xf32>
      %191 = vector.broadcast %190 : vector<16x1xf32> to vector<16x32xf32>
      %192 = arith.subf %178, %191 : vector<16x32xf32>
      %193 = arith.mulf %192, %192 : vector<16x32xf32>
      %cst_89 = arith.constant dense<0.000000e+00> : vector<16xf32>
      %194 = vector.multi_reduction <add>, %193, %cst_89 [1] : vector<16x32xf32> to vector<16xf32>
      %195 = vector.shape_cast %194 : vector<16xf32> to vector<16x1xf32>
      %cst_90 = arith.constant 0.0322580636 : f32
      %196 = vector.broadcast %cst_90 : f32 to vector<16x1xf32>
      %197 = arith.mulf %195, %196 : vector<16x1xf32>
      %198 = vector.broadcast %190 : vector<16x1xf32> to vector<16x32xf32>
      %199 = arith.subf %178, %198 : vector<16x32xf32>
      %200 = vector.shape_cast %184 : vector<32xf32> to vector<1x32xf32>
      %201 = vector.broadcast %200 : vector<1x32xf32> to vector<16x32xf32>
      %202 = arith.mulf %201, %199 : vector<16x32xf32>
      %203 = math.sqrt %197 : vector<16x1xf32>
      %cst_91 = arith.constant 9.99999997E-7 : f32
      %204 = vector.broadcast %cst_91 : f32 to vector<16x1xf32>
      %205 = arith.addf %203, %204 : vector<16x1xf32>
      %206 = vector.broadcast %205 : vector<16x1xf32> to vector<16x32xf32>
      %207 = arith.divf %202, %206 : vector<16x32xf32>
      %208 = vector.shape_cast %186 : vector<32xf32> to vector<1x32xf32>
      %209 = vector.broadcast %208 : vector<1x32xf32> to vector<16x32xf32>
      %210 = arith.addf %207, %209 : vector<16x32xf32>
      %211 = vector.shape_cast %210 : vector<16x32xf32> to vector<2x8x32xf32>
      %c0_92 = arith.constant 0 : index
      %c0_93 = arith.constant 0 : index
      %c0_94 = arith.constant 0 : index
      %212 = vector.load %arg11[%c0_92, %c0_93, %c0_94] : memref<2x8x32xf32, #tpu.memory_space<vmem>>, vector<2x8x32xf32>
      tpu.vector_store %arg11[%c0_92, %c0_93, %c0_94], %211 {strides = array<i32>} : memref<2x8x32xf32, #tpu.memory_space<vmem>>, vector<2x8x32xf32>,
    } else {
    }
    return
  }
  func.func @transform_0(%arg0: i32, %arg1: i32) -> (i32, i32, i32) {
    %c0_i32 = arith.constant 0 : i32
    %c0_i32_0 = arith.constant 0 : i32
    %c0_i32_1 = arith.constant 0 : i32
    return %arg0, %c0_i32, %c0_i32_0 : i32, i32, i32
  }
  func.func @transform_1(%arg0: i32, %arg1: i32) -> (i32, i32) {
    %c0_i32 = arith.constant 0 : i32
    %c0_i32_0 = arith.constant 0 : i32
    %c0_i32_1 = arith.constant 0 : i32
    return %c0_i32, %c0_i32_0 : i32, i32
  }
  func.func @transform_2(%arg0: i32, %arg1: i32) -> (i32, i32, i32) {
    %c0_i32 = arith.constant 0 : i32
    %c0_i32_0 = arith.constant 0 : i32
    %c0_i32_1 = arith.constant 0 : i32
    return %arg0, %c0_i32, %c0_i32_0 : i32, i32, i32
  }
  func.func @transform_3(%arg0: i32, %arg1: i32) -> (i32, i32, i32) {
    %c0_i32 = arith.constant 0 : i32
    %c0_i32_0 = arith.constant 0 : i32
    %c0_i32_1 = arith.constant 0 : i32
    return %arg1, %c0_i32, %c0_i32_0 : i32, i32, i32
  }
  func.func @transform_4(%arg0: i32, %arg1: i32) -> (i32, i32, i32) {
    %c0_i32 = arith.constant 0 : i32
    %c0_i32_0 = arith.constant 0 : i32
    %c0_i32_1 = arith.constant 0 : i32
    return %arg1, %c0_i32, %c0_i32_0 : i32, i32, i32
  }
  func.func @transform_5(%arg0: i32, %arg1: i32) -> (i32, i32, i32, i32) {
    %c0_i32 = arith.constant 0 : i32
    %c0_i32_0 = arith.constant 0 : i32
    %c0_i32_1 = arith.constant 0 : i32
    %c0_i32_2 = arith.constant 0 : i32
    return %arg1, %c0_i32, %c0_i32_0, %c0_i32_1 : i32, i32, i32, i32
  }
  func.func @transform_6(%arg0: i32, %arg1: i32) -> (i32, i32, i32) {
    %c0_i32 = arith.constant 0 : i32
    %c0_i32_0 = arith.constant 0 : i32
    %c0_i32_1 = arith.constant 0 : i32
    return %arg1, %c0_i32, %c0_i32_0 : i32, i32, i32
  }
  func.func @transform_7(%arg0: i32, %arg1: i32) -> (i32, i32, i32) {
    %c0_i32 = arith.constant 0 : i32
    %c0_i32_0 = arith.constant 0 : i32
    %c0_i32_1 = arith.constant 0 : i32
    return %arg1, %c0_i32, %c0_i32_0 : i32, i32, i32
  }
  func.func @transform_8(%arg0: i32, %arg1: i32) -> (i32, i32) {
    %c0_i32 = arith.constant 0 : i32
    %c0_i32_0 = arith.constant 0 : i32
    %c0_i32_1 = arith.constant 0 : i32
    return %c0_i32, %c0_i32_0 : i32, i32
  }
  func.func @transform_9(%arg0: i32, %arg1: i32) -> (i32, i32, i32) {
    %c0_i32 = arith.constant 0 : i32
    %c0_i32_0 = arith.constant 0 : i32
    %c0_i32_1 = arith.constant 0 : i32
    return %arg0, %c0_i32, %c0_i32_0 : i32, i32, i32
  }
}

</mosaic_0001>

<bundles_post_ra>
// kernel: decoder_forward.1
= control target key start
LH: loop header
LB: loop body
LE: loop exit
PB: predicated region body
PF: predicated region fallthrough
CT: control target
= control target key end

     0   :  { %14 = vsyncpa [#allocation4], 0  ;;  %s4452_s0 = inlined_call_operand.vmem [shape: f32[4,8,32], index: 0, kind: input, shape index: {}]   ;;  %s4453_s1 = inlined_call_operand.vmem [shape: f32[8,32], index: 1, kind: input, shape index: {}]   ;;  %s4454_s2 = inlined_call_operand.vmem [shape: bf16[4,8,8], index: 2, kind: input, shape index: {}]   ;;  %s4455_s3 = inlined_call_operand.vmem [shape: f32[2,9,32], index: 3, kind: input, shape index: {}]   ;;  %s4456_s4 = inlined_call_operand.vmem [shape: f32[2,1,64], index: 4, kind: input, shape index: {}]   ;;  %s4457_s5 = inlined_call_operand.vmem [shape: bf16[2,4,32,32], index: 5, kind: input, shape index: {}]   ;;  %s4458_s6 = inlined_call_operand.vmem [shape: bf16[2,32,64], index: 6, kind: input, shape index: {}]   ;;  %s4459_s7 = inlined_call_operand.vmem [shape: bf16[2,64,32], index: 7, kind: input, shape index: {}]   ;;  %s4460_s8 = inlined_call_operand.vmem [shape: f32[2,32], index: 8, kind: input, shape index: {}]   ;;  %s4461_s9 = inlined_call_operand.hbm [shape: f32[4,8,32], index: 9, kind: output, shape index: {}]  }
   0x1   :  { %16 = vsyncpa [#allocation4 + $0x1], 0  ;;  %s3818_s30 = smov 0   ;;  %s3820_s10 = smov 0  }
   0x2   :  { %s3822_s11 = smov 0   ;;  %s3824_s12 = smov 0  }
   0x3   :  { %s3826_s13 = smov 0   ;;  %s3828_s14 = smov 0  }
   0x4   :  { %s3830_s15 = smov 0   ;;  %s3832_s16 = smov 0  }
   0x5 LB: > { %4467 = sst [smem:[#allocation6_spill]] %s3745_s14  ;;  %s3185_s17 = sadd.s32 4294967295, %s3753_s16   ;;  %s3753_s16 = sphi %s3832_s16, %s22_s16   ;;  %s3749_s15 = sphi %s3830_s15, %s4478_s15   ;;  %s3745_s14 = sphi %s3828_s14, %s4477_s14   ;;  %s3741_s13 = sphi %s3826_s13, %s4476_s13   ;;  %s3737_s12 = sphi %s3824_s12, %s4475_s12   ;;  %s3733_s11 = sphi %s3822_s11, %s4481_s11   ;;  %s3729_s10 = sphi %s3820_s10, %s4480_s10   ;;  %s3725_s30 = sphi %s3818_s30, %s4479_s30  }
   0x6   : > { %4468 = sst [smem:[#allocation7_spill]] %s3749_s15  ;;  %s3186_s18 = sadd.s32 4294967294, %s3753_s16  }
   0x7   : > { %s31_s19 = sadd.s32 1, %s3745_s14  ;;  %s34_s20 = sadd.s32 1, %s3749_s15 }
   0x8   : > { %p32_p0 = scmp.ge.s32.totalorder %s31_s19, 2  ;;  %p275_p1 = scmp.ne.s32.totalorder %s3733_s11, %s3729_s10 }
   0x9   : > { %p276_p2 = scmp.eq.s32.totalorder %s3185_s17, 3  ;;  %p281_p4 = scmp.ne.s32.totalorder %s3729_s10, %s3725_s30 }
   0xa   : > { %s4483_s19 = smov (%p32_p0, %s31_s19), 0  ;;  %s4485_s20 = smov (!%p32_p0, %s34_s20), %s3749_s15 }
   0xb   : > { %4469 = sst [smem:[#allocation8_spill]] %s4483_s19  ;;  %p3867_p3 = por %p276_p2, %p275_p1 }
   0xc   : > { %p36_p5 = scmp.ge.s32.totalorder %s4485_s20, 2  ;;  %p282_p6 = scmp.eq.s32.totalorder %s3186_s18, 3 }
   0xd   : > { %p3189_p7 = scmp.ge.s32.totalorder %s3753_s16, 1  ;;  %p362_p8 = scmp.lt.s32.totalorder %s3753_s16, 5 }
   0xe   : > { %s4487_s20 = smov (%p36_p5, %s4485_s20), 0  ;;  %p3877_p9 = por %p282_p6, %p281_p4 }
   0xf   : > { %4471 = sst [smem:[#allocation9_spill]] %s4487_s20  ;;  %p363_p10 = pnand %p3189_p7, %p362_p8 }
  0x10   : > { %s262_s23 = ssub.s32 %s3749_s15, %s4487_s20  ;;  %s265_s24 = sadd.s32 1, %s3733_s11  ;;  %v466_v1 = vld [vmem:[%s4453_s1] sm:$0xff] (!%p363_p10)  ;;  %v470_v5 = vld [vmem:[#allocation2 + $0x8] sm:$0xff] (!%p363_p10)  ;;  %vm485_vm1 = vcmask (!%p363_p10), 261120   ;;  %v3755_v24 = vmov (!%p363_p10), 0.0   ;;  %vm3756_vm2 = vmmov (!%p363_p10), 0  }
  0x11   : > { %p263_p11 = scmp.eq.s32.totalorder %s262_s23, 0  ;;  %366 = sbr.rel (%p363_p10) target bundleno = 3528 (0xdc8), region = 56  ;;  %v469_v2 = vld [vmem:[#allocation2] sm:$0xff] (!%p363_p10)  ;;  %3343 = vmatprep.subr.bf16.mxu0 (!%p363_p10), %v3755_v24  ;;  %3351 = vmatprep.subr.bf16.mxu1 (!%p363_p10), %v3755_v24  ;;  %vm1540_vm7 = vcmask (!%p363_p10), 64512   ;;  %vm1776_vm8 = vcmask (!%p363_p10), 1043456   ;;  %vm2107_vm9 = vcmask (!%p363_p10), 130048  }
  0x12   : > { %s3191_s26 = sshll.u32 (!%p363_p10), %s3741_s13, 1  ;;  %p463_p12 = scmp.eq.s32.totalorder (!%p363_p10), %s3737_s12, 0  ;;  %3347 = vmatprep.mubr.msk.bf16.mxu0 (!%p363_p10), %vm3756_vm2, %v3755_v24  ;;  %3355 = vmatprep.mubr.msk.bf16.mxu1 (!%p363_p10), %vm3756_vm2, %v3755_v24  ;;  %vm2109_vm10 = vcmask (!%p363_p10), 195584   ;;  %vm2920_vm15 = vcmask (!%p363_p10), 523264  }
  0x13   : > { %s3885_s25 = scalar_select %p263_p11, %s3733_s11, %s265_s24  }
  0x14   : > { %p427_p13 = scmp.lt.s32.totalorder (!%p363_p10), %s3191_s26, 3  ;;  %p438_p0 = scmp.lt.s32.totalorder (!%p363_p10), %s3737_s12, 1 }
  0x15   : > { %s4465_s15 = sand.u32 (!%p363_p10), 1, %s3729_s10   ;;  %s3757_s23 = smov (!%p363_p10), 112  }
  0x16   : > { %s3758_s24 = smov (!%p363_p10), 120   ;;  %p3278_p1 = scmp.ne.s32.totalorder (!%p363_p10), %s3737_s12, 1 }
  0x18   : > { %s471_s27 = scalar_select %p463_p12, 1, 0 }
  0x19   : > { %s4489_s26 = smov (!%p427_p13, %s3191_s26), 3 }
  0x1a   : > { %v472_v0 = vstv %s471_s27  ;;  %s3893_s28 = scalar_select %p438_p0, %s3737_s12, 1 }
  0x1b   : > { %s3192_s29 = sshll.u32 %s4489_s26, 3  ;;  %vm473_vm0 = vcmp.eq.s32.totalorder %v472_v0, 1  ;;  %s3759_s27 = smov 104  }
  0x1c   : > { %s430_s20 = scalar_lea.vmem %s4452_s0, %s3192_s29  ;;  %s3287_s19 = sshll.u32 %s3893_s28, 6 }
  0x1d   : > { %v464_v3 = vld [vmem:[%s430_s20] sm:$0xff]  ;;  %v465_v4 = vld [vmem:[%s430_s20 + $0x8] sm:$0xff]  ;;  %s3906_s14 = scalar_lea.vmem %s4457_s5, %s3287_s19  ;;  %s3925_s19 = sshll.u32 %s4465_s15, 4 }
  0x1e   : > { %v467_v6 = vadd.f32 %v466_v1, %v464_v3  ;;  %v468_v7 = vadd.f32 %v466_v1, %v465_v4  ;;  %v3589_v22 = vld [vmem:[%s3906_s14] sm:$0xff]   ;;  %v3590_v23 = vld [vmem:[%s3906_s14 + $0x10] sm:$0xff]   ;;  %v3591_v25 = vld [vmem:[%s3906_s14 + $0x8] sm:$0xff]   ;;  %s4466_s20 = sshll.u32 %s3893_s28, 4  ;;  %s3194_s29 = sshll.u32 %s4489_s26, 2 }
  0x1f   : > { %3344 = vmatpush3.bf16.msra.mxu0 %v3589_v22  ;;  %3352 = vmatpush3.bf16.msra.mxu1 %v3590_v23  ;;  %v3592_v26 = vld [vmem:[%s3906_s14 + $0x18] sm:$0xff]   ;;  %s3945_s18 = scalar_lea.vmem %s4455_s3, %s4466_s20  ;;  %v3593_v53 = vld [vmem:[%s3906_s14 + $0x20] sm:$0xff]   ;;  %v3594_v55 = vld [vmem:[%s3906_s14 + $0x28] sm:$0xff]   ;;  %v3761_v23 = vmov 1934713408   ;;  %s436_s20 = scalar_lea.vmem %s4454_s2, %s3194_s29 }
  0x20   : > { %v3908_v8 = vsel %vm473_vm0, %v467_v6, %v469_v2  ;;  %v3910_v9 = vsel %vm473_vm0, %v468_v7, %v470_v5  ;;  %3345 = vmatprep.subr.bf16.mxu0 %v3755_v24  ;;  %3353 = vmatprep.subr.bf16.mxu1 %v3755_v24  ;;  %v3203_v43 = vld [vmem:[%s3945_s18] ss:$0 sm:$0xff]  ;;  %v3204_v49 = vld [vmem:[%s3945_s18 + $0x1] ss:$0 sm:$0xff]  ;;  %v3205_v56 = vld [vmem:[%s3945_s18 + $0x2] ss:$0 sm:$0xff] }
  0x21   : > { %v486_v10 = vsel %vm485_vm1, %v3908_v8, 0.0  ;;  %v489_v11 = vsel %vm485_vm1, %v3910_v9, 0.0  ;;  %v3213_v58 = vld [vmem:[%s3945_s18 + $0x3] ss:$0 sm:$0xff]  ;;  %s3764_s26 = smov 8   ;;  %s3765_s15 = smov 24  }
  0x22   : > { %487 = vadd.xlane.f32.xlu0 %v486_v10  ;;  %v3221_v10 = vld [vmem:[%s3945_s18 + $0x4] ss:$0 sm:$0xff]  ;;  %s3289_s29 = sshll.u32 %s3893_s28, 5 }
  0x23   : > { %3346 = vmatpush3.bf16.msra.mxu0 %v3591_v25  ;;  %3354 = vmatpush3.bf16.msra.mxu1 %v3592_v26  ;;  %v791_v25 = vunpack.c.l.s4 %v3761_v23 }
  0x24   : > { %3359 = vmatprep.subr.bf16.mxu0 %v3755_v24  ;;  %3367 = vmatprep.subr.bf16.mxu1 %v3755_v24 }
  0x26   : > { %490 = vadd.xlane.f32.xlu0 %v489_v11 }
  0xaf   : > { %v488_v12 = vpop.xlane.xlu0 %487 }
  0xb0   : > { %v493_v13 = vmul.f32 0.03125, %v488_v12 }
  0xb2   : > { %v495_v14 = vsub.f32 %v3908_v8, %v493_v13 }
  0xb3   : > { %v491_v15 = vpop.xlane.xlu0 %490 }
  0xb4   : > { %v494_v16 = vmul.f32 0.03125, %v491_v15  ;;  %v497_v17 = vmul.f32 %v495_v14, %v495_v14  ;;  %v511_v45 = vmul.f32 %v3203_v43, %v495_v14 }
  0xb6   : > { %v496_v18 = vsub.f32 %v3910_v9, %v494_v16  ;;  %v499_v19 = vsel %vm485_vm1, %v497_v17, 0.0 }
  0xb7   : > { %500 = vadd.xlane.f32.xlu1 %v499_v19 }
  0xb8   : > { %v498_v20 = vmul.f32 %v496_v18, %v496_v18  ;;  %v512_v46 = vmul.f32 %v3203_v43, %v496_v18  ;;  %v3760_v18 = vmov 1983009808  }
  0xb9   : > { %v760_v19 = vunpack.c.l.s4 %v3760_v18 }
  0xba   : > { %v502_v21 = vsel %vm485_vm1, %v498_v20, 0.0  ;;  %v762_v20 = vlaneseq }
  0xbb   : > { %503 = vadd.xlane.f32.xlu1 %v502_v21  ;;  %v761_v21 = vunpack.c.0.s8 %v760_v19 }
  0xbc   : > { %v763_v22 = vshrl.u32 %v762_v20, 7 }
 0x144   : > { %v501_v27 = vpop.xlane.xlu1 %500 }
 0x145   : > { %v505_v28 = vmul.f32 0.032258064, %v501_v27  ;;  %v3762_v27 = vmov 0  }
 0x147   : > { %3603 = vrsqrt.f32 %v505_v28  ;;  %vm515_vm3 = vcmp.eq.f32.partialorder %v505_v28, inf  ;;  %v518_v33 = vand.u32 2147483648, %v505_v28  ;;  %vm517_vm4 = vcmp.eq.f32.partialorder %v505_v28, 0.0 }
 0x148   : > { %v504_v29 = vpop.xlane.xlu1 %503 }
 0x149   : > { %v506_v30 = vmul.f32 0.032258064, %v504_v29 }
 0x14b   : > { %3605 = vrsqrt.f32 %v506_v30  ;;  %vm522_vm5 = vcmp.eq.f32.partialorder %v506_v30, inf  ;;  %v525_v39 = vand.u32 2147483648, %v506_v30  ;;  %vm524_vm6 = vcmp.eq.f32.partialorder %v506_v30, 0.0 }
 0x151   : > { %v3604_v31 = vpop.eup %3603 }
 0x152   : > { %v514_v32 = vmul.f32 %v3604_v31, %v505_v28 }
 0x154   : > { %v516_v34 = vsel %vm515_vm3, %v505_v28, %v514_v32  ;;  %v3978_v28 = vpack.i.b16 %v3762_v27, %v3762_v27 }
 0x155   : > { %v3606_v35 = vpop.eup %3605  ;;  %v519_v36 = vsel %vm517_vm4, %v518_v33, %v516_v34  ;;  %v3980_v33 = vsub.s32 %v761_v21, %v763_v22 }
 0x156   : > { %v527_v37 = vadd.f32 1e-06, %v519_v36  ;;  %v521_v38 = vmul.f32 %v3606_v35, %v506_v30  ;;  %v792_v35 = vunpack.c.0.s8 %v791_v25 }
 0x158   : > { %3607 = vrcp.f32 %v527_v37  ;;  %v523_v40 = vsel %vm522_vm5, %v506_v30, %v521_v38  ;;  %v3985_v43 = vsub.s32 %v792_v35, %v763_v22 }
 0x159   : > { %v526_v41 = vsel %vm524_vm6, %v525_v39, %v523_v40 }
 0x15a   : > { %v528_v42 = vadd.f32 1e-06, %v526_v41 }
 0x15c   : > { %3609 = vrcp.f32 %v528_v42 }
 0x162   : > { %v3608_v44 = vpop.eup %3607 }
 0x163   : > { %v530_v47 = vmul.f32 %v3608_v44, %v511_v45 }
 0x165   : > { %v537_v51 = vadd.f32 %v3204_v49, %v530_v47 }
 0x166   : > { %v3610_v48 = vpop.eup %3609 }
 0x167   : > { %v532_v50 = vmul.f32 %v3610_v48, %v512_v46 }
 0x169   : > { %v538_v52 = vadd.f32 %v3204_v49, %v532_v50 }
 0x16b   : > { %v539_v54 = vpack.c.bf16 %v538_v52, %v537_v51 }
 0x16d   : > { %3348 = vmatmul.mubr.msk.bf16.vlgmr.msra.gmra.mrb[0].mxu0 %vm485_vm1, %v539_v54  ;;  %3356 = vmatmul.mubr.msk.bf16.vlgmr.msra.gmra.mrb[0].mxu1 %vm485_vm1, %v539_v54 }
 0x16e   : > { %3360 = vmatpush3.bf16.msra.mxu0 %v3593_v53  ;;  %3363 = vmatprep.mubr.msk.bf16.mxu0 %vm3756_vm2, %v3755_v24 }
 0x16f   : > { %3361 = vmatprep.subr.bf16.mxu0 %v3755_v24  ;;  %3369 = vmatprep.mubr.msk.bf16.mxu1 %vm3756_vm2, %v3755_v24 }
 0x172   : > { %3362 = vmatpush3.bf16.msra.mxu0 %v3594_v55 }
 0x173   : > { %3373 = vmatprep.subr.bf16.mxu0 %v3755_v24 }
 0x175   : > { %3364 = vmatmul.mubr.msk.bf16.vlgmr.msra.gmra.mrb[4].mxu0 %vm485_vm1, %v539_v54 }
 0x176   : > { %3375 = vmatprep.mubr.msk.bf16.mxu0 %vm3756_vm2, %v3755_v24 }
 0x240   : > { %v597_v57 = vpop.f32.mrb[0].mxu0  ;;  %v659_v59 = vpop.f32.mrb[0].mxu1 }
 0x241   : > { %v3349_v60 = vpop.f32.mrb[1].mxu0  ;;  %v3357_v61 = vpop.f32.mrb[1].mxu1  ;;  %v598_v0 = vadd.f32 %v3205_v56, %v597_v57  ;;  %v660_v1 = vadd.f32 %v3213_v58, %v659_v59 }
 0x242   : > { %v600_v62 = vpop.f32.mrb[2].mxu0  ;;  %v662_v63 = vpop.f32.mrb[2].mxu1 }
 0x243   : > { %v601_v2 = vadd.f32 %v3205_v56, %v600_v62  ;;  %v663_v3 = vadd.f32 %v3213_v58, %v662_v63  ;;  %v3350_v4 = vpop.f32.mrb[3].mxu0  ;;  %v3358_v5 = vpop.f32.mrb[3].mxu1 }
 0x245   : > { %v3964_v6 = vpack.c.bf16 %v601_v2, %v598_v0  ;;  %v1002_v7 = vpack.c.bf16 %v663_v3, %v660_v1 }
 0x247   : > { %1006 = vrot.lane.b32.xlu1 %v1002_v7, %s3757_s23  ;;  %1004 = vrot.lane.b32.xlu0 %v1002_v7, %s3758_s24  ;;  %v1014_v31 = vshrl.u32 %v1002_v7, 16  ;;  %v740_v50 = vshrl.u32 %v3964_v6, 16 }
 0x248   : > { %v721_v11 = vpop.f32.mrb[4].mxu0 }
 0x249   : > { %v3365_v12 = vpop.f32.mrb[5].mxu0  ;;  %v722_v14 = vadd.f32 %v3221_v10, %v721_v11 }
 0x24a   : > { %v724_v13 = vpop.f32.mrb[6].mxu0 }
 0x24b   : > { %v725_v15 = vadd.f32 %v3221_v10, %v724_v13  ;;  %1008 = vrot.lane.b32.xlu1 %v1002_v7, %s3759_s27  ;;  %732 = vrot.lane.b32.xlu0 %v3964_v6, %s3757_s23  ;;  %v3366_v16 = vpop.f32.mrb[7].mxu0 }
 0x24d   : > { %v3972_v17 = vpack.c.bf16 %v725_v15, %v722_v14 }
 0x24f   : > { %730 = vrot.lane.b32.xlu1 %v3964_v6, %s3758_s24 }
 0x253   : > { %734 = vrot.lane.b32.xlu1 %v3964_v6, %s3759_s27 }
 0x2b9   : > { %v1007_v26 = vpop.permute.xlu1 %1006  ;;  %v1005_v29 = vpop.permute.xlu0 %1004 }
 0x2ba   : > { %v1012_v30 = vpack.i.b16 %v1005_v29, %v1002_v7  ;;  %v1015_v32 = vshrl.u32 %v1005_v29, 16  ;;  %v1022_v40 = vshrl.u32 %v1007_v26, 16 }
 0x2bc   : > { %v1016_v34 = vpack.i.b16 %v1015_v32, %v1014_v31  ;;  %v1026_v36 = vcombine.high %v1012_v30, %v3978_v28  ;;  %v1033_v42 = vrot.slane %v1012_v30, %v3980_v33 }
 0x2bd   : > { %v1009_v37 = vpop.permute.xlu1 %1008  ;;  %v733_v10 = vpop.permute.xlu0 %732 }
 0x2be   : > { %v1092_v38 = vcombine.high %v1016_v34, %v3978_v28  ;;  %v1020_v39 = vpack.i.b16 %v1009_v37, %v1007_v26  ;;  %v1023_v41 = vshrl.u32 %v1009_v37, 16  ;;  %v1040_v46 = vrot.slane %v1026_v36, %v3980_v33 }
 0x2bf   : > { %v1099_v47 = vrot.slane %v1016_v34, %v3980_v33  ;;  %v748_v21 = vshrl.u32 %v733_v10, 16 }
 0x2c0   : > { %v1041_v44 = vcombine.high %v1020_v39, %v3978_v28  ;;  %v1048_v45 = vrot.slane %v1020_v39, %v3980_v33  ;;  %v1024_v48 = vpack.i.b16 %v1023_v41, %v1022_v40  ;;  %v1106_v51 = vrot.slane %v1092_v38, %v3980_v33 }
 0x2c1   : > { %v731_v49 = vpop.permute.xlu1 %730 }
 0x2c2   : > { %v1055_v52 = vrot.slane %v1041_v44, %v3980_v33  ;;  %v1056_v53 = vcombine.low %v1033_v42, %v1048_v45  ;;  %v1057_v54 = vcombine.high %v1033_v42, %v1048_v45  ;;  %v1107_v55 = vcombine.high %v1024_v48, %v3978_v28 }
 0x2c3   : > { %v1114_v56 = vrot.slane %v1024_v48, %v3980_v33  ;;  %v738_v57 = vpack.i.b16 %v731_v49, %v3964_v6  ;;  %v741_v58 = vshrl.u32 %v731_v49, 16 }
 0x2c4   : > { %v1064_v59 = vrot.slane %v1056_v53, %v3985_v43  ;;  %v1071_v60 = vrot.slane %v1057_v54, %v3985_v43  ;;  %v1072_v61 = vcombine.low %v1040_v46, %v1055_v52  ;;  %v1073_v62 = vcombine.high %v1040_v46, %v1055_v52 }
 0x2c5   : > { %v1121_v63 = vrot.slane %v1107_v55, %v3980_v33  ;;  %v1122_v0 = vcombine.low %v1099_v47, %v1114_v56  ;;  %v1123_v1 = vcombine.high %v1099_v47, %v1114_v56  ;;  %v742_v2 = vpack.i.b16 %v741_v58, %v740_v50  ;;  %v735_v16 = vpop.permute.xlu1 %734 }
 0x2c6   : > { %v1080_v3 = vrot.slane %v1072_v61, %v3985_v43  ;;  %v1087_v4 = vrot.slane %v1073_v62, %v3985_v43  ;;  %v1158_v5 = vcombine.low %v1064_v59, %v1071_v60  ;;  %v3229_v7 = vcombine.high %v1064_v59, %v1071_v60 }
 0x2c7   : > { %v1130_v6 = vrot.slane %v1122_v0, %v3985_v43  ;;  %v1137_v11 = vrot.slane %v1123_v1, %v3985_v43  ;;  %v1138_v12 = vcombine.low %v1106_v51, %v1121_v63  ;;  %v1139_v13 = vcombine.high %v1106_v51, %v1121_v63 }
 0x2c8   : > { %v1174_v14 = vcombine.low %v1080_v3, %v1087_v4  ;;  %v3230_v15 = vcombine.high %v1080_v3, %v1087_v4  ;;  %v4007_v20 = vrot.slane %v1158_v5, %v3980_v33  ;;  %v1173_v22 = vrot.slane %v3229_v7, %v3980_v33 }
 0x2c9   : > { %v1146_v18 = vrot.slane %v1138_v12, %v3985_v43  ;;  %v1153_v19 = vrot.slane %v1139_v13, %v3985_v43  ;;  %v1208_v23 = vcombine.low %v1130_v6, %v1137_v11  ;;  %v758_v25 = vcombine.high %v738_v57, %v3978_v28 }
 0x2ca   : > { %v824_v26 = vcombine.high %v742_v2, %v3978_v28  ;;  %v3231_v27 = vcombine.high %v1130_v6, %v1137_v11  ;;  %v765_v29 = vrot.slane %v738_v57, %v3980_v33  ;;  %v746_v30 = vpack.i.b16 %v735_v16, %v733_v10 }
 0x2cb   : > { %v749_v31 = vshrl.u32 %v735_v16, 16  ;;  %v1224_v32 = vcombine.low %v1146_v18, %v1153_v19  ;;  %v831_v34 = vrot.slane %v742_v2, %v3980_v33  ;;  %v1181_v35 = vrot.slane %v1174_v14, %v3980_v33 }
 0x2cc   : > { %v1189_v36 = vrot.slane %v3230_v15, %v3980_v33  ;;  %v3232_v37 = vcombine.high %v1146_v18, %v1153_v19  ;;  %v773_v39 = vcombine.high %v746_v30, %v3978_v28  ;;  %v780_v40 = vrot.slane %v746_v30, %v3980_v33 }
 0x2cd   : > { %v750_v38 = vpack.i.b16 %v749_v31, %v748_v21  ;;  %v772_v41 = vrot.slane %v758_v25, %v3980_v33  ;;  %v838_v42 = vrot.slane %v824_v26, %v3980_v33  ;;  %v1190_v44 = vcombine.low %v4007_v20, %v1173_v22 }
 0x2ce   : > { %v1198_v45 = vcombine.low %v1181_v35, %v1189_v36  ;;  %v787_v46 = vrot.slane %v773_v39, %v3980_v33  ;;  %v788_v47 = vcombine.low %v765_v29, %v780_v40  ;;  %v789_v48 = vcombine.high %v765_v29, %v780_v40 }
 0x2cf   : > { %v839_v49 = vcombine.high %v750_v38, %v3978_v28  ;;  %v846_v50 = vrot.slane %v750_v38, %v3980_v33  ;;  %v1215_v51 = vrot.slane %v1208_v23, %v3980_v33  ;;  %v1223_v52 = vrot.slane %v3231_v27, %v3980_v33 }
 0x2d0   : > { %v1231_v53 = vrot.slane %v1224_v32, %v3980_v33  ;;  %v796_v54 = vrot.slane %v788_v47, %v3985_v43  ;;  %v803_v55 = vrot.slane %v789_v48, %v3985_v43  ;;  %v804_v56 = vcombine.low %v772_v41, %v787_v46 }
 0x2d1   : > { %v805_v57 = vcombine.high %v772_v41, %v787_v46  ;;  %v853_v58 = vrot.slane %v839_v49, %v3980_v33  ;;  %v854_v59 = vcombine.low %v831_v34, %v846_v50  ;;  %v855_v60 = vcombine.high %v831_v34, %v846_v50 }
 0x2d2   : > { %v1239_v61 = vrot.slane %v3232_v37, %v3980_v33  ;;  %v812_v62 = vrot.slane %v804_v56, %v3985_v43  ;;  %v890_v0 = vcombine.low %v796_v54, %v803_v55  ;;  %v3225_v1 = vcombine.high %v796_v54, %v803_v55 }
 0x2d3   : > { %v819_v63 = vrot.slane %v805_v57, %v3985_v43  ;;  %v862_v2 = vrot.slane %v854_v59, %v3985_v43  ;;  %v869_v3 = vrot.slane %v855_v60, %v3985_v43  ;;  %v870_v4 = vcombine.low %v838_v42, %v853_v58 }
 0x2d4   : > { %v871_v5 = vcombine.high %v838_v42, %v853_v58  ;;  %v897_v7 = vrot.slane %v890_v0, %v3980_v33  ;;  %v905_v10 = vrot.slane %v3225_v1, %v3980_v33  ;;  %v1205_v19 = vrot.slane %v1198_v45, %v3985_v43 }
 0x2d5   : > { %v906_v6 = vcombine.low %v812_v62, %v819_v63  ;;  %v3226_v11 = vcombine.high %v812_v62, %v819_v63  ;;  %v878_v12 = vrot.slane %v870_v4, %v3985_v43  ;;  %v940_v14 = vcombine.low %v862_v2, %v869_v3 }
 0x2d6   : > { %v885_v13 = vrot.slane %v871_v5, %v3985_v43  ;;  %v3227_v15 = vcombine.high %v862_v2, %v869_v3  ;;  %v1240_v20 = vcombine.low %v1215_v51, %v1223_v52  ;;  %v1197_v27 = vrot.slane %v1190_v44, %v3985_v43 }
 0x2d7   : > { %v913_v16 = vrot.slane %v906_v6, %v3980_v33  ;;  %v921_v18 = vrot.slane %v3226_v11, %v3980_v33  ;;  %v947_v21 = vrot.slane %v940_v14, %v3980_v33  ;;  %v1248_v29 = vcombine.low %v1231_v53, %v1239_v61 }
 0x2d8   : > { %v955_v22 = vrot.slane %v3227_v15, %v3980_v33  ;;  %v956_v23 = vcombine.low %v878_v12, %v885_v13  ;;  %v3228_v25 = vcombine.high %v878_v12, %v885_v13  ;;  %v922_v30 = vcombine.low %v897_v7, %v905_v10  ;;  %v4101_v10 = vld [vmem:[%s436_s20] sm:$0xff]   ;;  %s4473_s20 = sshll.u32 %s3893_s28, 4 }
 0x2d9   : > { %v930_v26 = vcombine.low %v913_v16, %v921_v18  ;;  %v1206_v35 = vcombine.low %v1197_v27, %v1205_v19  ;;  %v1247_v36 = vrot.slane %v1240_v20, %v3985_v43  ;;  %v1255_v37 = vrot.slane %v1248_v29, %v3985_v43 }
 0x2da   : > { %v963_v31 = vrot.slane %v956_v23, %v3980_v33  ;;  %v971_v32 = vrot.slane %v3228_v25, %v3980_v33  ;;  %v972_v34 = vcombine.low %v947_v21, %v955_v22  ;;  %v929_v41 = vrot.slane %v922_v30, %v3985_v43 }
 0x2db   : > { %v1256_v39 = vcombine.low %v1247_v36, %v1255_v37  ;;  %v937_v40 = vrot.slane %v930_v26, %v3985_v43  ;;  %v1261_v46 = vshrl.u32 %v1206_v35, 16  ;;  %v1257_v48 = vcombine.high %v1247_v36, %v1255_v37 }
 0x2dc   : > { %v980_v38 = vcombine.low %v963_v31, %v971_v32  ;;  %v979_v42 = vrot.slane %v972_v34, %v3985_v43  ;;  %v1207_v53 = vcombine.high %v1197_v27, %v1205_v19  ;;  %v1539_v6 = vunpack.c.l.bf16 %v4101_v10 }
 0x2dd   : > { %v4053_v45 = vpack.i.b16 %v1256_v39, %v1206_v35  ;;  %v1262_v47 = vshrl.u32 %v1256_v39, 16  ;;  %v938_v52 = vcombine.low %v929_v41, %v937_v40  ;;  %v1268_v56 = vshrl.u32 %v1257_v48, 16 }
 0x2de   : > { %v987_v44 = vrot.slane %v980_v38, %v3985_v43  ;;  %v4064_v58 = vpack.i.b16 %v1257_v48, %v1207_v53  ;;  %v1267_v60 = vshrl.u32 %v1207_v53, 16  ;;  %v939_v2 = vcombine.high %v929_v41, %v937_v40 }
 0x2df   : > { %v1545_v50 = vsel %vm1540_vm7, %v4053_v45, 0  ;;  %v4057_v51 = vpack.i.b16 %v1262_v47, %v1261_v46  ;;  %v993_v59 = vshrl.u32 %v938_v52, 16 }
 0x2e0   : > { %v988_v49 = vcombine.low %v979_v42, %v987_v44  ;;  %3368 = vmatpush3.bf16.xpose.msra.mxu1 %v1545_v50  ;;  %v4069_v62 = vpack.i.b16 %v1268_v56, %v1267_v60  ;;  %v1637_v63 = vsel %vm1540_vm7, %v4064_v58, 0  ;;  %v989_v0 = vcombine.high %v979_v42, %v987_v44 }
 0x2e1   : > { %v1591_v54 = vsel %vm1540_vm7, %v4057_v51, 0  ;;  %3379 = vmatprep.subr.bf16.mxu1 %v3755_v24  ;;  %v999_v5 = vshrl.u32 %v939_v2, 16 }
 0x2e2   : > { %v994_v55 = vshrl.u32 %v988_v49, 16  ;;  %3374 = vmatpush3.bf16.xpose.msra.mxu0 %v1591_v54  ;;  %v4062_v57 = vpack.i.b16 %v988_v49, %v938_v52  ;;  %v1683_v1 = vsel %vm1540_vm7, %v4069_v62, 0  ;;  %v1000_v3 = vshrl.u32 %v989_v0, 16 }
 0x2e3   : > { %3385 = vmatprep.subr.bf16.mxu0 %v3755_v24  ;;  %v4085_v4 = vpack.i.b16 %v989_v0, %v939_v2 }
 0x2e4   : > { %v4067_v61 = vpack.i.b16 %v994_v55, %v993_v59  ;;  %v4089_v7 = vpack.i.b16 %v1000_v3, %v999_v5 }
 0x2e7   : > { %3370 = vmatmul.mubr.msk.bf16.vlgmr.msra.gmra.mrb[4].mxu1 %vm1540_vm7, %v4062_v57 }
 0x2e8   : > { %3380 = vmatpush3.bf16.xpose.msra.mxu1 %v1637_v63  ;;  %3381 = vmatprep.mubr.msk.bf16.mxu1 %vm3756_vm2, %v3755_v24 }
 0x2e9   : > { %3376 = vmatmul.mubr.msk.bf16.vlgmr.msra.gmra.mrb[8].mxu0 %vm1540_vm7, %v4067_v61  ;;  %3391 = vmatprep.subr.bf16.mxu1 %v3755_v24 }
 0x2ea   : > { %3386 = vmatpush3.bf16.xpose.msra.mxu0 %v1683_v1  ;;  %3387 = vmatprep.mubr.msk.bf16.mxu0 %vm3756_vm2, %v3755_v24 }
 0x2eb   : > { %3397 = vmatprep.subr.bf16.mxu0 %v3755_v24 }
 0x2ef   : > { %3382 = vmatmul.mubr.msk.bf16.vlgmr.msra.gmra.mrb[8].mxu1 %vm1540_vm7, %v4085_v4 }
 0x2f0   : > { %3393 = vmatprep.mubr.msk.bf16.mxu1 %vm3756_vm2, %v3755_v24 }
 0x2f1   : > { %3388 = vmatmul.mubr.msk.bf16.vlgmr.msra.gmra.mrb[12].mxu0 %vm1540_vm7, %v4089_v7 }
 0x2f2   : > { %3399 = vmatprep.mubr.msk.bf16.mxu0 %vm3756_vm2, %v3755_v24 }
 0x3ba   : > { %v1581_v11 = vpop.f32.mrb[4].mxu1 }
 0x3bb   : > { %v1582_v12 = vadd.f32 %v1581_v11, %v1539_v6  ;;  %v3371_v13 = vpop.f32.mrb[5].mxu1 }
 0x3bc   : > { %v1584_v14 = vpop.f32.mrb[6].mxu1  ;;  %v1627_v15 = vpop.f32.mrb[8].mxu0 }
 0x3bd   : > { %v1628_v16 = vadd.f32 %v1627_v15, %v1539_v6  ;;  %v3372_v18 = vpop.f32.mrb[7].mxu1  ;;  %v3377_v19 = vpop.f32.mrb[9].mxu0  ;;  %v1725_v20 = vsel %vm1540_vm7, %v1582_v12, -inf }
 0x3be   : > { %1726 = vmax.xlane.f32.xlu0 %v1725_v20  ;;  %v1630_v21 = vpop.f32.mrb[10].mxu0 }
 0x3bf   : > { %v3378_v22 = vpop.f32.mrb[11].mxu0  ;;  %v1728_v23 = vsel %vm1540_vm7, %v1628_v16, -inf }
 0x3c0   : > { %1729 = vmax.xlane.f32.xlu1 %v1728_v23 }
 0x3c2   : > { %v1673_v25 = vpop.f32.mrb[8].mxu1 }
 0x3c3   : > { %v1674_v26 = vadd.f32 %v1673_v25, %v1539_v6  ;;  %v3383_v27 = vpop.f32.mrb[9].mxu1 }
 0x3c4   : > { %v1676_v29 = vpop.f32.mrb[10].mxu1  ;;  %v1719_v30 = vpop.f32.mrb[12].mxu0 }
 0x3c5   : > { %v1720_v31 = vadd.f32 %v1719_v30, %v1539_v6  ;;  %v3384_v32 = vpop.f32.mrb[11].mxu1  ;;  %v3389_v34 = vpop.f32.mrb[13].mxu0  ;;  %v1731_v35 = vsel %vm1540_vm7, %v1674_v26, -inf  ;;  %v1282_v6 = vshrl.u32 %v3972_v17, 16 }
 0x3c6   : > { %1732 = vmax.xlane.f32.xlu0 %v1731_v35  ;;  %v1722_v36 = vpop.f32.mrb[14].mxu0 }
 0x3c7   : > { %v3390_v37 = vpop.f32.mrb[15].mxu0  ;;  %v1734_v38 = vsel %vm1540_vm7, %v1720_v31, -inf }
 0x3ca   : > { %1735 = vmax.xlane.f32.xlu0 %v1734_v38 }
 0x3d1   : > { %1274 = vrot.lane.b32.xlu1 %v3972_v17, %s3757_s23 }
 0x3d5   : > { %1276 = vrot.lane.b32.xlu1 %v3972_v17, %s3759_s27  ;;  %s455_s27 = scalar_lea.vmem %s4458_s6, %s4473_s20 }
 0x3e0   : > { %1272 = vrot.lane.b32.xlu0 %v3972_v17, %s3758_s24  ;;  %s445_s24 = scalar_lea.vmem %s4456_s4, %s3893_s28  ;;  %s4371_s28 = scalar_lea.vmem [#allocation3], %s3925_s19 }
 0x44b   : > { %v1727_v39 = vpop.xlane.xlu0 %1726 }
 0x44c   : > { %v1737_v40 = vsub.f32 %v1582_v12, %v1727_v39 }
 0x44d   : > { %v1730_v41 = vpop.xlane.xlu1 %1729 }
 0x44e   : > { %v1741_v42 = vmul.f32 1.442695, %v1737_v40  ;;  %v1738_v44 = vsub.f32 %v1628_v16, %v1730_v41 }
 0x450   : > { %3611 = vpow2.f32 %v1741_v42  ;;  %v1743_v46 = vmul.f32 1.442695, %v1738_v44 }
 0x451   : > { %v1275_v47 = vpop.permute.xlu1 %1274 }
 0x452   : > { %3613 = vpow2.f32 %v1743_v46  ;;  %v1290_v54 = vshrl.u32 %v1275_v47, 16 }
 0x453   : > { %v1733_v48 = vpop.xlane.xlu0 %1732 }
 0x454   : > { %v1739_v49 = vsub.f32 %v1674_v26, %v1733_v48 }
 0x455   : > { %v1277_v50 = vpop.permute.xlu1 %1276 }
 0x456   : > { %v1745_v52 = vmul.f32 1.442695, %v1739_v49  ;;  %v1291_v53 = vshrl.u32 %v1277_v50, 16  ;;  %v1288_v55 = vpack.i.b16 %v1277_v50, %v1275_v47 }
 0x457   : > { %v1736_v56 = vpop.xlane.xlu0 %1735 }
 0x458   : > { %3615 = vpow2.f32 %v1745_v52  ;;  %v1292_v59 = vpack.i.b16 %v1291_v53, %v1290_v54  ;;  %v1740_v60 = vsub.f32 %v1720_v31, %v1736_v56  ;;  %v1309_v0 = vcombine.high %v1288_v55, %v3978_v28 }
 0x459   : > { %v1316_v15 = vrot.slane %v1288_v55, %v3980_v33 }
 0x45a   : > { %v4114_v63 = vpop.eup %3611  ;;  %v1747_v1 = vmul.f32 1.442695, %v1740_v60  ;;  %v1375_v13 = vcombine.high %v1292_v59, %v3978_v28  ;;  %v1323_v20 = vrot.slane %v1309_v0, %v3980_v33  ;;  %v1382_v25 = vrot.slane %v1292_v59, %v3980_v33 }
 0x45b   : > { %v1273_v2 = vpop.permute.xlu0 %1272  ;;  %v1749_v3 = vsel %vm1540_vm7, %v4114_v63, 0.0 }
 0x45c   : > { %v4119_v5 = vpop.eup %3613  ;;  %v1280_v11 = vpack.i.b16 %v1273_v2, %v3972_v17  ;;  %v1283_v12 = vshrl.u32 %v1273_v2, 16  ;;  %1750 = vadd.xlane.f32.xlu1 %v1749_v3  ;;  %3617 = vpow2.f32 %v1747_v1  ;;  %v1389_v26 = vrot.slane %v1375_v13, %v3980_v33 }
 0x45d   : > { %v1752_v14 = vsel %vm1540_vm7, %v4119_v5, 0.0 }
 0x45e   : > { %v1284_v16 = vpack.i.b16 %v1283_v12, %v1282_v6  ;;  %v1294_v18 = vcombine.high %v1280_v11, %v3978_v28  ;;  %v1301_v19 = vrot.slane %v1280_v11, %v3980_v33  ;;  %1753 = vadd.xlane.f32.xlu0 %v1752_v14 }
 0x460   : > { %v1308_v17 = vrot.slane %v1294_v18, %v3980_v33  ;;  %v1324_v21 = vcombine.low %v1301_v19, %v1316_v15  ;;  %v1325_v22 = vcombine.high %v1301_v19, %v1316_v15  ;;  %v1360_v23 = vcombine.high %v1284_v16, %v3978_v28 }
 0x461   : > { %v1367_v27 = vrot.slane %v1284_v16, %v3980_v33 }
 0x462   : > { %v4135_v29 = vpop.eup %3615  ;;  %v1332_v30 = vrot.slane %v1324_v21, %v3985_v43  ;;  %v1339_v31 = vrot.slane %v1325_v22, %v3985_v43  ;;  %v1340_v32 = vcombine.low %v1308_v17, %v1323_v20  ;;  %v1341_v34 = vcombine.high %v1308_v17, %v1323_v20 }
 0x463   : > { %v1374_v35 = vrot.slane %v1360_v23, %v3980_v33  ;;  %v1390_v36 = vcombine.low %v1367_v27, %v1382_v25  ;;  %v1391_v37 = vcombine.high %v1367_v27, %v1382_v25  ;;  %v1755_v28 = vsel %vm1540_vm7, %v4135_v29, 0.0 }
 0x464   : > { %v1348_v38 = vrot.slane %v1340_v32, %v3985_v43  ;;  %v1355_v39 = vrot.slane %v1341_v34, %v3985_v43  ;;  %v1426_v40 = vcombine.low %v1332_v30, %v1339_v31  ;;  %v3233_v41 = vcombine.high %v1332_v30, %v1339_v31  ;;  %1756 = vadd.xlane.f32.xlu0 %v1755_v28 }
 0x465   : > { %v1398_v42 = vrot.slane %v1390_v36, %v3985_v43  ;;  %v1405_v44 = vrot.slane %v1391_v37, %v3985_v43  ;;  %v1406_v46 = vcombine.low %v1374_v35, %v1389_v26  ;;  %v1407_v47 = vcombine.high %v1374_v35, %v1389_v26 }
 0x466   : > { %v1433_v48 = vrot.slane %v1426_v40, %v3980_v33  ;;  %v1441_v49 = vrot.slane %v3233_v41, %v3980_v33  ;;  %v1442_v50 = vcombine.low %v1348_v38, %v1355_v39  ;;  %v3234_v52 = vcombine.high %v1348_v38, %v1355_v39  ;;  %v4148_v53 = vpop.eup %3617 }
 0x467   : > { %v1414_v54 = vrot.slane %v1406_v46, %v3985_v43  ;;  %v1421_v55 = vrot.slane %v1407_v47, %v3985_v43  ;;  %v1476_v56 = vcombine.low %v1398_v42, %v1405_v44  ;;  %v3235_v59 = vcombine.high %v1398_v42, %v1405_v44 }
 0x468   : > { %v1758_v60 = vsel %vm1540_vm7, %v4148_v53, 0.0  ;;  %v1449_v0 = vrot.slane %v1442_v50, %v3980_v33  ;;  %v1457_v1 = vrot.slane %v3234_v52, %v3980_v33  ;;  %v1458_v2 = vcombine.low %v1433_v48, %v1441_v49 }
 0x469   : > { %v1492_v3 = vcombine.low %v1414_v54, %v1421_v55  ;;  %v3236_v6 = vcombine.high %v1414_v54, %v1421_v55  ;;  %1759 = vadd.xlane.f32.xlu0 %v1758_v60  ;;  %v1483_v11 = vrot.slane %v1476_v56, %v3980_v33  ;;  %v1491_v12 = vrot.slane %v3235_v59, %v3980_v33 }
 0x46a   : > { %v1466_v13 = vcombine.low %v1449_v0, %v1457_v1  ;;  %v1465_v18 = vrot.slane %v1458_v2, %v3985_v43 }
 0x46b   : > { %v1499_v14 = vrot.slane %v1492_v3, %v3980_v33  ;;  %v1507_v15 = vrot.slane %v3236_v6, %v3980_v33  ;;  %v1508_v16 = vcombine.low %v1483_v11, %v1491_v12 }
 0x46c   : > { %v1473_v19 = vrot.slane %v1466_v13, %v3985_v43 }
 0x46d   : > { %v1516_v20 = vcombine.low %v1499_v14, %v1507_v15  ;;  %v1515_v22 = vrot.slane %v1508_v16, %v3985_v43  ;;  %v2163_v15 = vrot.slane %v4057_v51, 4 }
 0x46e   : > { %v1474_v17 = vcombine.low %v1465_v18, %v1473_v19  ;;  %v1475_v21 = vcombine.high %v1465_v18, %v1473_v19  ;;  %v2259_v18 = vrot.slane %v4069_v62, 4  ;;  %v2210_v19 = vrot.slane %v4085_v4, 4 }
 0x46f   : > { %v1523_v23 = vrot.slane %v1516_v20, %v3985_v43 }
 0x470   : > { %v1529_v27 = vshrl.u32 %v1474_v17, 16  ;;  %v1535_v30 = vshrl.u32 %v1475_v21, 16 }
 0x471   : > { %v1524_v25 = vcombine.low %v1515_v22, %v1523_v23  ;;  %v1525_v26 = vcombine.high %v1515_v22, %v1523_v23 }
 0x473   : > { %v1528_v31 = vpack.i.b16 %v1524_v25, %v1474_v17  ;;  %v1530_v32 = vshrl.u32 %v1524_v25, 16  ;;  %v1534_v34 = vpack.i.b16 %v1525_v26, %v1475_v21  ;;  %v1536_v35 = vshrl.u32 %v1525_v26, 16 }
 0x475   : > { %v1778_v36 = vsel %vm1776_vm8, %v1528_v31, 0  ;;  %v1531_v37 = vpack.i.b16 %v1530_v32, %v1529_v27  ;;  %v1870_v28 = vsel %vm1776_vm8, %v1534_v34, 0  ;;  %v1537_v38 = vpack.i.b16 %v1536_v35, %v1535_v30 }
 0x476   : > { %3392 = vmatpush3.bf16.msra.mxu1 %v1778_v36  ;;  %v2354_v39 = vrot.slane %v1528_v31, 4  ;;  %v2448_v40 = vrot.slane %v1534_v34, 4 }
 0x477   : > { %v1824_v41 = vsel %vm1776_vm8, %v1531_v37, 0  ;;  %3403 = vmatprep.subr.bf16.mxu1 %v3755_v24  ;;  %v1916_v42 = vsel %vm1776_vm8, %v1537_v38, 0  ;;  %v2401_v44 = vrot.slane %v1531_v37, 4  ;;  %v2495_v46 = vrot.slane %v1537_v38, 4 }
 0x478   : > { %3398 = vmatpush3.bf16.msra.mxu0 %v1824_v41  ;;  %v2359_v47 = vsel %vm1776_vm8, %v2354_v39, 0  ;;  %v4171_v48 = vsel %vm1776_vm8, %v2448_v40, 0  ;;  %v2113_v38 = vunpack.c.h.bf16 %v4101_v10 }
 0x479   : > { %3409 = vmatprep.subr.bf16.mxu0 %v3755_v24  ;;  %v4175_v49 = vsel %vm1776_vm8, %v2401_v44, 0  ;;  %v4178_v50 = vsel %vm1776_vm8, %v2495_v46, 0 }
 0x4e9   : > { %v1751_v52 = vpop.xlane.xlu1 %1750 }
 0x4ea   : > { %3619 = vrcp.f32 %v1751_v52 }
 0x4eb   : > { %v1754_v54 = vpop.xlane.xlu0 %1753 }
 0x4ec   : > { %3621 = vrcp.f32 %v1754_v54 }
 0x4f1   : > { %v1757_v55 = vpop.xlane.xlu0 %1756 }
 0x4f2   : > { %3623 = vrcp.f32 %v1757_v55 }
 0x4f4   : > { %v3620_v56 = vpop.eup %3619 }
 0x4f5   : > { %v1765_v59 = vmul.f32 %v3620_v56, %v4114_v63 }
 0x4f6   : > { %v3622_v60 = vpop.eup %3621  ;;  %v1760_v0 = vpop.xlane.xlu0 %1759 }
 0x4f7   : > { %v1766_v1 = vmul.f32 %v3622_v60, %v4119_v5  ;;  %3625 = vrcp.f32 %v1760_v0  ;;  %v1769_v2 = vpack.c.bf16 %v1765_v59, %v1765_v59  ;;  %v2115_v5 = vrot.slane %v4053_v45, 4 }
 0x4f8   : > { %v2168_v45 = vsel %vm1540_vm7, %v2163_v15, 0 }
 0x4f9   : > { %3394 = vmatmul.mubr.msk.bf16.vlgmr.msra.gmra.mrb[12].mxu1 %vm1540_vm7, %v1769_v2  ;;  %v1770_v3 = vpack.c.bf16 %v1766_v1, %v1766_v1  ;;  %v2120_v14 = vsel %vm1540_vm7, %v2115_v5, 0 }
 0x4fa   : > { %3404 = vmatpush3.bf16.msra.mxu1 %v1870_v28  ;;  %3405 = vmatprep.mubr.msk.bf16.mxu1 %vm3756_vm2, %v3755_v24 }
 0x4fb   : > { %3400 = vmatmul.mubr.msk.bf16.vlgmr.msra.gmra.mrb[16].mxu0 %vm1540_vm7, %v1770_v3  ;;  %3415 = vmatprep.subr.bf16.mxu1 %v3755_v24 }
 0x4fc   : > { %v3624_v6 = vpop.eup %3623  ;;  %3410 = vmatpush3.bf16.msra.mxu0 %v1916_v42  ;;  %3411 = vmatprep.mubr.msk.bf16.mxu0 %vm3756_vm2, %v3755_v24 }
 0x4fd   : > { %v1767_v63 = vmul.f32 %v3624_v6, %v4135_v29  ;;  %3421 = vmatprep.subr.bf16.mxu0 %v3755_v24  ;;  %v2211_v29 = vrot.slane %v4064_v58, 4  ;;  %v2162_v58 = vrot.slane %v4067_v61, 4  ;;  %v2258_v61 = vrot.slane %v4089_v7, 4 }
 0x4ff   : > { %v1771_v11 = vpack.c.bf16 %v1767_v63, %v1767_v63  ;;  %v2216_v51 = vsel %vm1540_vm7, %v2211_v29, 0 }
 0x501   : > { %v3626_v12 = vpop.eup %3625  ;;  %3406 = vmatmul.mubr.msk.bf16.vlgmr.msra.gmra.mrb[16].mxu1 %vm1540_vm7, %v1771_v11 }
 0x502   : > { %v1768_v13 = vmul.f32 %v3626_v12, %v4148_v53  ;;  %3417 = vmatprep.mubr.msk.bf16.mxu1 %vm3756_vm2, %v3755_v24  ;;  %v2114_v53 = vrot.slane %v4062_v57, 4  ;;  %v2264_v57 = vsel %vm1540_vm7, %v2259_v18, 0 }
 0x503   : > { %3416 = vmatpush3.bf16.xpose.msra.mxu1 %v2120_v14 }
 0x504   : > { %v1772_v16 = vpack.c.bf16 %v1768_v13, %v1768_v13  ;;  %3427 = vmatprep.subr.bf16.mxu1 %v3755_v24 }
 0x506   : > { %3412 = vmatmul.mubr.msk.bf16.vlgmr.msra.gmra.mrb[20].mxu0 %vm1540_vm7, %v1772_v16 }
 0x507   : > { %3422 = vmatpush3.bf16.xpose.msra.mxu0 %v2168_v45  ;;  %3423 = vmatprep.mubr.msk.bf16.mxu0 %vm3756_vm2, %v3755_v24 }
 0x508   : > { %3433 = vmatprep.subr.bf16.mxu0 %v3755_v24 }
 0x50a   : > { %3418 = vmatmul.mubr.msk.bf16.vlgmr.msra.gmra.mrb[20].mxu1 %vm1540_vm7, %v2114_v53 }
 0x50b   : > { %3428 = vmatpush3.bf16.xpose.msra.mxu1 %v2216_v51  ;;  %3429 = vmatprep.mubr.msk.bf16.mxu1 %vm3756_vm2, %v3755_v24 }
 0x50c   : > { %3439 = vmatprep.subr.bf16.mxu1 %v3755_v24 }
 0x50e   : > { %3424 = vmatmul.mubr.msk.bf16.vlgmr.msra.gmra.mrb[24].mxu0 %vm1540_vm7, %v2162_v58 }
 0x50f   : > { %3434 = vmatpush3.bf16.xpose.msra.mxu0 %v2264_v57  ;;  %3435 = vmatprep.mubr.msk.bf16.mxu0 %vm3756_vm2, %v3755_v24 }
 0x510   : > { %3445 = vmatprep.subr.bf16.mxu0 %v3755_v24 }
 0x512   : > { %3430 = vmatmul.mubr.msk.bf16.vlgmr.msra.gmra.mrb[24].mxu1 %vm1540_vm7, %v2210_v19 }
 0x513   : > { %3440 = vmatpush3.bf16.msra.mxu1 %v2359_v47  ;;  %3441 = vmatprep.mubr.msk.bf16.mxu1 %vm3756_vm2, %v3755_v24 }
 0x514   : > { %3451 = vmatprep.subr.bf16.mxu1 %v3755_v24 }
 0x516   : > { %3436 = vmatmul.mubr.msk.bf16.vlgmr.msra.gmra.mrb[28].mxu0 %vm1540_vm7, %v2258_v61 }
 0x517   : > { %3446 = vmatpush3.bf16.msra.mxu0 %v4175_v49  ;;  %3447 = vmatprep.mubr.msk.bf16.mxu0 %vm3756_vm2, %v3755_v24 }
 0x518   : > { %3457 = vmatprep.subr.bf16.mxu0 %v3755_v24 }
 0x5cc   : > { %v1814_v62 = vpop.f32.mrb[12].mxu1 }
 0x5cd   : > { %v3395_v4 = vpop.f32.mrb[13].mxu1 }
 0x5ce   : > { %v1817_v20 = vpop.f32.mrb[14].mxu1  ;;  %v1860_v17 = vpop.f32.mrb[16].mxu0 }
 0x5cf   : > { %v3396_v21 = vpop.f32.mrb[15].mxu1  ;;  %v3401_v22 = vpop.f32.mrb[17].mxu0 }
 0x5d0   : > { %v1863_v23 = vpop.f32.mrb[18].mxu0 }
 0x5d1   : > { %v3402_v25 = vpop.f32.mrb[19].mxu0 }
 0x5d4   : > { %v1906_v7 = vpop.f32.mrb[16].mxu1 }
 0x5d5   : > { %v1958_v26 = vcombine.low %v1814_v62, %v1906_v7  ;;  %v1959_v27 = vcombine.high %v1814_v62, %v1906_v7  ;;  %v3407_v30 = vpop.f32.mrb[17].mxu1 }
 0x5d6   : > { %v1909_v31 = vpop.f32.mrb[18].mxu1 }
 0x5d7   : > { %v3408_v32 = vpop.f32.mrb[19].mxu1  ;;  %v1966_v39 = vrot.slane %v1958_v26, %v3980_v33  ;;  %v1973_v40 = vrot.slane %v1959_v27, %v3980_v33 }
 0x5d9   : > { %v1952_v34 = vpop.f32.mrb[20].mxu0 }
 0x5da   : > { %v1974_v35 = vcombine.low %v1860_v17, %v1952_v34  ;;  %v1975_v36 = vcombine.high %v1860_v17, %v1952_v34  ;;  %v3413_v37 = vpop.f32.mrb[21].mxu0 }
 0x5db   : > { %v1955_v28 = vpop.f32.mrb[22].mxu0 }
 0x5dc   : > { %v1982_v41 = vrot.slane %v1974_v35, %v3980_v33  ;;  %v1989_v42 = vrot.slane %v1975_v36, %v3980_v33  ;;  %v3414_v44 = vpop.f32.mrb[23].mxu0 }
 0x5dd   : > { %v2156_v46 = vpop.f32.mrb[20].mxu1 }
 0x5de   : > { %v1990_v47 = vcombine.low %v1966_v39, %v1982_v41  ;;  %v1991_v49 = vcombine.high %v1966_v39, %v1982_v41  ;;  %v2006_v52 = vcombine.low %v1973_v40, %v1989_v42  ;;  %v2007_v54 = vcombine.high %v1973_v40, %v1989_v42  ;;  %v3419_v55 = vpop.f32.mrb[21].mxu1 }
 0x5df   : > { %v2157_v56 = vadd.f32 %v2156_v46, %v2113_v38  ;;  %v2159_v59 = vpop.f32.mrb[22].mxu1 }
 0x5e0   : > { %v1998_v60 = vrot.slane %v1990_v47, %v3985_v43  ;;  %v2005_v10 = vrot.slane %v1991_v49, %v3985_v43  ;;  %v2014_v0 = vrot.slane %v2006_v52, %v3985_v43  ;;  %v2021_v1 = vrot.slane %v2007_v54, %v3985_v43  ;;  %v3420_v2 = vpop.f32.mrb[23].mxu1 }
 0x5e1   : > { %v2306_v3 = vsel %vm1540_vm7, %v2157_v56, -inf  ;;  %v2204_v6 = vpop.f32.mrb[24].mxu0 }
 0x5e2   : > { %v2026_v63 = vcombine.low %v1998_v60, %v2005_v10  ;;  %v3245_v5 = vcombine.high %v1998_v60, %v2005_v10  ;;  %v2042_v11 = vcombine.low %v2014_v0, %v2021_v1  ;;  %v3246_v12 = vcombine.high %v2014_v0, %v2021_v1  ;;  %2307 = vmax.xlane.f32.xlu1 %v2306_v3  ;;  %v3425_v13 = vpop.f32.mrb[25].mxu0 }
 0x5e3   : > { %v2205_v14 = vadd.f32 %v2204_v6, %v2113_v38  ;;  %v2207_v15 = vpop.f32.mrb[26].mxu0 }
 0x5e4   : > { %v2033_v16 = vrot.slane %v2026_v63, %v3980_v33  ;;  %v2041_v45 = vrot.slane %v3245_v5, %v3980_v33  ;;  %v2049_v29 = vrot.slane %v2042_v11, %v3980_v33  ;;  %v2057_v53 = vrot.slane %v3246_v12, %v3980_v33  ;;  %v3426_v51 = vpop.f32.mrb[27].mxu0 }
 0x5e5   : > { %v2252_v18 = vpop.f32.mrb[24].mxu1  ;;  %v2309_v58 = vsel %vm1540_vm7, %v2205_v14, -inf }
 0x5e6   : > { %v2253_v57 = vadd.f32 %v2252_v18, %v2113_v38  ;;  %2310 = vmax.xlane.f32.xlu0 %v2309_v58  ;;  %v3431_v19 = vpop.f32.mrb[25].mxu1  ;;  %v2059_v61 = vcombine.high %v2033_v16, %v2041_v45  ;;  %v2075_v62 = vcombine.high %v2049_v29, %v2057_v53  ;;  %v2058_v4 = vcombine.low %v2033_v16, %v2041_v45 }
 0x5e7   : > { %v2255_v20 = vpop.f32.mrb[26].mxu1  ;;  %v2074_v17 = vcombine.low %v2049_v29, %v2057_v53 }
 0x5e8   : > { %v3432_v21 = vpop.f32.mrb[27].mxu1  ;;  %v2312_v22 = vsel %vm1540_vm7, %v2253_v57, -inf  ;;  %v4246_v23 = vrot.slane %v2059_v61, %v3985_v43  ;;  %v4249_v25 = vrot.slane %v2075_v62, %v3985_v43  ;;  %v4252_v7 = vrot.slane %v2058_v4, %v3985_v43 }
 0x5e9   : > { %2313 = vmax.xlane.f32.xlu1 %v2312_v22  ;;  %v2300_v26 = vpop.f32.mrb[28].mxu0  ;;  %v4255_v27 = vrot.slane %v2074_v17, %v3985_v43 }
 0x5ea   : > { %v2301_v30 = vadd.f32 %v2300_v26, %v2113_v38  ;;  %v3437_v31 = vpop.f32.mrb[29].mxu0  ;;  %v2092_v32 = vcombine.low %v4246_v23, %v4249_v25  ;;  %v2093_v34 = vcombine.high %v4246_v23, %v4249_v25 }
 0x5eb   : > { %v2303_v35 = vpop.f32.mrb[30].mxu0  ;;  %v2090_v36 = vcombine.low %v4252_v7, %v4255_v27  ;;  %v2091_v37 = vcombine.high %v4252_v7, %v4255_v27  ;;  %v3262_v7 = vld [vmem:[%s3945_s18 + $0x5] ss:$0 sm:$0xff] }
 0x5ec   : > { %v3438_v28 = vpop.f32.mrb[31].mxu0  ;;  %v2315_v39 = vsel %vm1540_vm7, %v2301_v30, -inf }
 0x5ed   : > { %2316 = vmax.xlane.f32.xlu0 %v2315_v39 }
 0x66f   : > { %v2308_v40 = vpop.xlane.xlu1 %2307 }
 0x670   : > { %v2318_v38 = vsub.f32 %v2157_v56, %v2308_v40 }
 0x672   : > { %v2322_v41 = vmul.f32 1.442695, %v2318_v38 }
 0x673   : > { %v2311_v42 = vpop.xlane.xlu0 %2310 }
 0x674   : > { %3627 = vpow2.f32 %v2322_v41  ;;  %v2319_v44 = vsub.f32 %v2205_v14, %v2311_v42 }
 0x676   : > { %v2324_v46 = vmul.f32 1.442695, %v2319_v44  ;;  %v2314_v47 = vpop.xlane.xlu1 %2313 }
 0x677   : > { %v2320_v49 = vsub.f32 %v2253_v57, %v2314_v47 }
 0x678   : > { %3629 = vpow2.f32 %v2324_v46 }
 0x679   : > { %v2326_v52 = vmul.f32 1.442695, %v2320_v49 }
 0x67a   : > { %v2317_v54 = vpop.xlane.xlu0 %2316 }
 0x67b   : > { %3631 = vpow2.f32 %v2326_v52  ;;  %v2321_v55 = vsub.f32 %v2301_v30, %v2317_v54 }
 0x67d   : > { %v2328_v59 = vmul.f32 1.442695, %v2321_v55 }
 0x67e   : > { %v3628_v60 = vpop.eup %3627 }
 0x67f   : > { %3633 = vpow2.f32 %v2328_v59  ;;  %v2330_v10 = vsel %vm1540_vm7, %v3628_v60, 0.0 }
 0x680   : > { %2331 = vadd.xlane.f32.xlu1 %v2330_v10 }
 0x682   : > { %v3630_v0 = vpop.eup %3629 }
 0x683   : > { %v2333_v56 = vsel %vm1540_vm7, %v3630_v0, 0.0 }
 0x684   : > { %2334 = vadd.xlane.f32.xlu0 %v2333_v56 }
 0x685   : > { %v3632_v1 = vpop.eup %3631 }
 0x686   : > { %v2336_v2 = vsel %vm1540_vm7, %v3632_v1, 0.0 }
 0x687   : > { %2337 = vadd.xlane.f32.xlu1 %v2336_v2 }
 0x689   : > { %v3634_v3 = vpop.eup %3633 }
 0x68a   : > { %v2339_v6 = vsel %vm1540_vm7, %v3634_v3, 0.0 }
 0x68b   : > { %2340 = vadd.xlane.f32.xlu0 %v2339_v6 }
 0x70d   : > { %v2332_v63 = vpop.xlane.xlu1 %2331 }
 0x70e   : > { %3635 = vrcp.f32 %v2332_v63 }
 0x711   : > { %v2335_v5 = vpop.xlane.xlu0 %2334 }
 0x712   : > { %3637 = vrcp.f32 %v2335_v5  ;;  %v3595_v5 = vld [vmem:[%s3906_s14 + $0x30] sm:$0xff]  }
 0x714   : > { %v2338_v11 = vpop.xlane.xlu1 %2337 }
 0x715   : > { %3639 = vrcp.f32 %v2338_v11 }
 0x718   : > { %v3636_v12 = vpop.eup %3635  ;;  %v2341_v13 = vpop.xlane.xlu0 %2340 }
 0x719   : > { %v2346_v14 = vmul.f32 %v3636_v12, %v3628_v60  ;;  %3641 = vrcp.f32 %v2341_v13 }
 0x71b   : > { %v2350_v15 = vpack.c.bf16 %v2346_v14, %v2346_v14 }
 0x71c   : > { %v3638_v16 = vpop.eup %3637 }
 0x71d   : > { %v2347_v45 = vmul.f32 %v3638_v16, %v3630_v0  ;;  %3442 = vmatmul.mubr.msk.bf16.vlgmr.msra.gmra.mrb[28].mxu1 %vm1540_vm7, %v2350_v15 }
 0x71e   : > { %3452 = vmatpush3.bf16.msra.mxu1 %v4171_v48  ;;  %3453 = vmatprep.mubr.msk.bf16.mxu1 %vm3756_vm2, %v3755_v24 }
 0x71f   : > { %v3640_v29 = vpop.eup %3639  ;;  %v2351_v53 = vpack.c.bf16 %v2347_v45, %v2347_v45  ;;  %3463 = vmatprep.subr.bf16.mxu1 %v3755_v24 }
 0x720   : > { %v2348_v51 = vmul.f32 %v3640_v29, %v3632_v1 }
 0x721   : > { %3448 = vmatmul.mubr.msk.bf16.vlgmr.msra.gmra.mrb[32].mxu0 %vm1540_vm7, %v2351_v53  ;;  %v3596_v53 = vld [vmem:[%s3906_s14 + $0x38] sm:$0xff]   ;;  %s3763_s14 = smov 16  }
 0x722   : > { %3458 = vmatpush3.bf16.msra.mxu0 %v4178_v50  ;;  %v2352_v18 = vpack.c.bf16 %v2348_v51, %v2348_v51  ;;  %3459 = vmatprep.mubr.msk.bf16.mxu0 %vm3756_vm2, %v3755_v24 }
 0x723   : > { %v3642_v58 = vpop.eup %3641  ;;  %3471 = vmatprep.subr.bf16.mxu0 %v3755_v24 }
 0x724   : > { %v2349_v48 = vmul.f32 %v3642_v58, %v3634_v3 }
 0x725   : > { %3454 = vmatmul.mubr.msk.bf16.vlgmr.msra.gmra.mrb[32].mxu1 %vm1540_vm7, %v2352_v18 }
 0x726   : > { %v2353_v57 = vpack.c.bf16 %v2349_v48, %v2349_v48  ;;  %3467 = vmatprep.mubr.msk.bf16.mxu1 %vm3756_vm2, %v3755_v24  ;;  %3464 = vmatpush3.bf16.msra.mxu1 %v3595_v5 }
 0x727   : > { %3465 = vmatprep.subr.bf16.mxu1 %v3755_v24 }
 0x729   : > { %3460 = vmatmul.mubr.msk.bf16.vlgmr.msra.gmra.mrb[36].mxu0 %vm1540_vm7, %v2353_v57 }
 0x72a   : > { %3475 = vmatprep.mubr.msk.bf16.mxu0 %vm3756_vm2, %v3755_v24  ;;  %3466 = vmatpush3.bf16.msra.mxu1 %v3596_v53 }
 0x72b   : > { %3479 = vmatprep.subr.bf16.mxu1 %v3755_v24 }
 0x7f0   : > { %v2395_v50 = vpop.f32.mrb[28].mxu1 }
 0x7f1   : > { %v3443_v19 = vpop.f32.mrb[29].mxu1 }
 0x7f2   : > { %v2398_v61 = vpop.f32.mrb[30].mxu1 }
 0x7f3   : > { %v3444_v62 = vpop.f32.mrb[31].mxu1 }
 0x7f4   : > { %v2442_v4 = vpop.f32.mrb[32].mxu0 }
 0x7f5   : > { %v3449_v20 = vpop.f32.mrb[33].mxu0 }
 0x7f6   : > { %v2445_v17 = vpop.f32.mrb[34].mxu0 }
 0x7f7   : > { %v3450_v21 = vpop.f32.mrb[35].mxu0 }
 0x7f8   : > { %v2489_v22 = vpop.f32.mrb[32].mxu1 }
 0x7f9   : > { %v2542_v26 = vcombine.low %v2395_v50, %v2489_v22  ;;  %v2543_v30 = vcombine.high %v2395_v50, %v2489_v22  ;;  %v3455_v31 = vpop.f32.mrb[33].mxu1 }
 0x7fa   : > { %v2492_v35 = vpop.f32.mrb[34].mxu1 }
 0x7fb   : > { %v3456_v28 = vpop.f32.mrb[35].mxu1  ;;  %v2550_v44 = vrot.slane %v2542_v26, %v3980_v33  ;;  %v2557_v46 = vrot.slane %v2543_v30, %v3980_v33 }
 0x7fc   : > { %v2536_v39 = vpop.f32.mrb[36].mxu0 }
 0x7fd   : > { %v2558_v40 = vcombine.low %v2442_v4, %v2536_v39  ;;  %v2559_v38 = vcombine.high %v2442_v4, %v2536_v39  ;;  %v3461_v41 = vpop.f32.mrb[37].mxu0 }
 0x7fe   : > { %v2539_v42 = vpop.f32.mrb[38].mxu0 }
 0x7ff   : > { %v2566_v47 = vrot.slane %v2558_v40, %v3980_v33  ;;  %v2573_v49 = vrot.slane %v2559_v38, %v3980_v33  ;;  %v3462_v52 = vpop.f32.mrb[39].mxu0 }
 0x801   : > { %v2574_v54 = vcombine.low %v2550_v44, %v2566_v47  ;;  %v2575_v55 = vcombine.high %v2550_v44, %v2566_v47  ;;  %v2590_v59 = vcombine.low %v2557_v46, %v2573_v49  ;;  %v2591_v60 = vcombine.high %v2557_v46, %v2573_v49 }
 0x803   : > { %v2582_v10 = vrot.slane %v2574_v54, %v3985_v43  ;;  %v2589_v0 = vrot.slane %v2575_v55, %v3985_v43  ;;  %v2598_v56 = vrot.slane %v2590_v59, %v3985_v43  ;;  %v2605_v1 = vrot.slane %v2591_v60, %v3985_v43 }
 0x805   : > { %v2610_v2 = vcombine.low %v2582_v10, %v2589_v0  ;;  %v3256_v3 = vcombine.high %v2582_v10, %v2589_v0  ;;  %v2626_v6 = vcombine.low %v2598_v56, %v2605_v1  ;;  %v3257_v63 = vcombine.high %v2598_v56, %v2605_v1  ;;  %v3597_v1 = vld [vmem:[%s455_s27] sm:$0xff]  }
 0x806   : > { %3472 = vmatpush3.bf16.msra.mxu0 %v3597_v1 }
 0x807   : > { %v2617_v11 = vrot.slane %v2610_v2, %v3980_v33  ;;  %v2625_v12 = vrot.slane %v3256_v3, %v3980_v33  ;;  %v2633_v13 = vrot.slane %v2626_v6, %v3980_v33  ;;  %v2641_v14 = vrot.slane %v3257_v63, %v3980_v33  ;;  %v3598_v2 = vld [vmem:[%s455_s27 + $0x8] sm:$0xff]   ;;  %3473 = vmatprep.subr.bf16.mxu0 %v3755_v24 }
 0x809   : > { %v2643_v15 = vcombine.high %v2617_v11, %v2625_v12  ;;  %v2659_v16 = vcombine.high %v2633_v13, %v2641_v14  ;;  %v2642_v45 = vcombine.low %v2617_v11, %v2625_v12  ;;  %v2658_v29 = vcombine.low %v2633_v13, %v2641_v14 }
 0x80a   : > { %3474 = vmatpush3.bf16.msra.mxu0 %v3598_v2 }
 0x80b   : > { %v2657_v51 = vrot.slane %v2643_v15, %v3985_v43  ;;  %v2673_v18 = vrot.slane %v2659_v16, %v3985_v43  ;;  %v2650_v58 = vrot.slane %v2642_v45, %v3985_v43  ;;  %v2666_v48 = vrot.slane %v2658_v29, %v3985_v43 }
 0x80d   : > { %v2676_v33 = vcombine.low %v2657_v51, %v2673_v18  ;;  %v2675_v57 = vcombine.high %v2650_v58, %v2666_v48  ;;  %v2674_v50 = vcombine.low %v2650_v58, %v2666_v48  ;;  %v2677_v19 = vcombine.high %v2657_v51, %v2673_v18 }
 0x80f   : > { %v3579_v61 = vpack.i.bf16 %v2676_v33, %v2092_v32  ;;  %v3574_v62 = vpack.i.bf16 %v2675_v57, %v2091_v37  ;;  %v3584_v4 = vpack.i.bf16 %v2677_v19, %v2093_v34  ;;  %v3266_v57 = vld [vmem:[%s3945_s18 + $0x6] ss:$0 sm:$0xff] }
 0x811   : > { %3580 = vrot.lane.b32.xlu0 %v3579_v61, %s3763_s14  ;;  %3575 = vrot.lane.b32.xlu1 %v3574_v62, %s3764_s26 }
 0x815   : > { %3585 = vrot.lane.b32.xlu1 %v3584_v4, %s3765_s15  ;;  %s4349_s15 = scalar_lea.vmem %s4459_s7, %s3289_s29 }
 0x816   : > { %v3599_v3 = vld [vmem:[%s4349_s15] sm:$0xff]   ;;  %v3600_v6 = vld [vmem:[%s4349_s15 + $0x8] sm:$0xff]  }
 0x883   : > { %v3581_v43 = vpop.permute.xlu0 %3580  ;;  %v3576_v20 = vpop.permute.xlu1 %3575 }
 0x884   : > { %v3578_v17 = vunpack.i.h.bf16 %v3576_v20  ;;  %v3577_v21 = vunpack.i.l.bf16 %v3576_v20  ;;  %v3583_v32 = vunpack.i.h.bf16 %v3581_v43  ;;  %v3582_v22 = vunpack.i.l.bf16 %v3581_v43  ;;  %v3267_v43 = vld [vmem:[%s3945_s18 + $0x7] ss:$0 sm:$0xff] }
 0x886   : > { %v2106_v23 = vsel %vm1540_vm7, %v2090_v36, %v3577_v21  ;;  %v2690_v25 = vsel %vm1540_vm7, %v2674_v50, %v3578_v17 }
 0x887   : > { %v3586_v34 = vpop.permute.xlu1 %3585  ;;  %v2108_v30 = vsel %vm2107_vm9, %v2106_v23, %v3582_v22  ;;  %v2691_v31 = vsel %vm2107_vm9, %v2690_v25, %v3583_v32  ;;  %v3601_v22 = vld [vmem:[%s4349_s15 + $0x10] sm:$0xff]   ;;  %v3602_v23 = vld [vmem:[%s4349_s15 + $0x18] sm:$0xff]   ;;  %v3268_v25 = vld [vmem:[%s445_s24] ss:$0 sm:$0xff] }
 0x888   : > { %v3588_v37 = vunpack.i.h.bf16 %v3586_v34  ;;  %v3587_v26 = vunpack.i.l.bf16 %v3586_v34 }
 0x88a   : > { %v2110_v35 = vsel %vm2109_vm10, %v2108_v30, %v3587_v26  ;;  %v2692_v28 = vsel %vm2109_vm10, %v2691_v31, %v3588_v37 }
 0x88b   : > { %v2693_v39 = vpack.c.bf16 %v2692_v28, %v2110_v35 }
 0x88d   : > { %3468 = vmatmul.mubr.msk.bf16.vlgmr.msra.gmra.mrb[36].mxu1 %vm485_vm1, %v2693_v39 }
 0x88e   : > { %3487 = vmatprep.mubr.msk.bf16.mxu1 %vm3756_vm2, %v3755_v24  ;;  %3480 = vmatpush3.bf16.msra.mxu1 %v3599_v3 }
 0x88f   : > { %3481 = vmatprep.subr.bf16.mxu1 %v3755_v24 }
 0x892   : > { %3482 = vmatpush3.bf16.msra.mxu1 %v3600_v6 }
 0x893   : > { %3483 = vmatprep.subr.bf16.mxu1 %v3755_v24 }
 0x896   : > { %3484 = vmatpush3.bf16.msra.mxu1 %v3601_v22 }
 0x897   : > { %3485 = vmatprep.subr.bf16.mxu1 %v3755_v24  ;;  %v3272_v24 = vld [vmem:[%s3945_s18 + $0x8] ss:$0 sm:$0xff] }
 0x89a   : > { %3486 = vmatpush3.bf16.msra.mxu1 %v3602_v23 }
 0x960   : > { %v2752_v27 = vpop.f32.mrb[36].mxu1 }
 0x961   : > { %v2753_v36 = vadd.f32 %v3262_v7, %v2752_v27  ;;  %v3469_v40 = vpop.f32.mrb[37].mxu1 }
 0x962   : > { %v2755_v38 = vpop.f32.mrb[38].mxu1 }
 0x963   : > { %v4326_v41 = vadd.f32 %v2753_v36, %v3908_v8  ;;  %v2756_v42 = vadd.f32 %v3262_v7, %v2755_v38  ;;  %v3470_v44 = vpop.f32.mrb[39].mxu1 }
 0x965   : > { %v4329_v46 = vadd.f32 %v2756_v42, %v3910_v9  ;;  %v2761_v47 = vsel %vm485_vm1, %v4326_v41, 0.0 }
 0x966   : > { %2762 = vadd.xlane.f32.xlu1 %v2761_v47 }
 0x967   : > { %v2764_v49 = vsel %vm485_vm1, %v4329_v46, 0.0 }
 0x968   : > { %2765 = vadd.xlane.f32.xlu0 %v2764_v49 }
 0x9f3   : > { %v2763_v52 = vpop.xlane.xlu1 %2762 }
 0x9f4   : > { %v2767_v54 = vmul.f32 0.03125, %v2763_v52 }
 0x9f5   : > { %v2766_v55 = vpop.xlane.xlu0 %2765 }
 0x9f6   : > { %v2769_v8 = vsub.f32 %v4326_v41, %v2767_v54  ;;  %v2768_v59 = vmul.f32 0.03125, %v2766_v55 }
 0x9f8   : > { %v2770_v60 = vsub.f32 %v4329_v46, %v2768_v59  ;;  %v2771_v9 = vmul.f32 %v2769_v8, %v2769_v8  ;;  %v2785_v19 = vmul.f32 %v3266_v57, %v2769_v8 }
 0x9fa   : > { %v2773_v10 = vsel %vm485_vm1, %v2771_v9, 0.0  ;;  %v2772_v0 = vmul.f32 %v2770_v60, %v2770_v60  ;;  %v2786_v61 = vmul.f32 %v3266_v57, %v2770_v60 }
 0x9fb   : > { %2774 = vadd.xlane.f32.xlu0 %v2773_v10 }
 0x9fc   : > { %v2776_v56 = vsel %vm485_vm1, %v2772_v0, 0.0 }
 0x9fd   : > { %2777 = vadd.xlane.f32.xlu1 %v2776_v56 }
 0xa88   : > { %v2775_v63 = vpop.xlane.xlu0 %2774 }
 0xa89   : > { %v2779_v5 = vmul.f32 0.032258064, %v2775_v63 }
 0xa8a   : > { %v2778_v11 = vpop.xlane.xlu1 %2777 }
 0xa8b   : > { %3643 = vrsqrt.f32 %v2779_v5  ;;  %v2780_v12 = vmul.f32 0.032258064, %v2778_v11  ;;  %vm2789_vm11 = vcmp.eq.f32.partialorder %v2779_v5, inf  ;;  %v2792_v15 = vand.u32 2147483648, %v2779_v5 }
 0xa8c   : > { %vm2791_vm12 = vcmp.eq.f32.partialorder %v2779_v5, 0.0 }
 0xa8d   : > { %3645 = vrsqrt.f32 %v2780_v12  ;;  %vm2796_vm13 = vcmp.eq.f32.partialorder %v2780_v12, inf  ;;  %v2799_v18 = vand.u32 2147483648, %v2780_v12  ;;  %vm2798_vm14 = vcmp.eq.f32.partialorder %v2780_v12, 0.0 }
 0xa95   : > { %v3644_v13 = vpop.eup %3643 }
 0xa96   : > { %v2788_v14 = vmul.f32 %v3644_v13, %v2779_v5 }
 0xa97   : > { %v3646_v16 = vpop.eup %3645 }
 0xa98   : > { %v2790_v45 = vsel %vm2789_vm11, %v2779_v5, %v2788_v14  ;;  %v2795_v53 = vmul.f32 %v3646_v16, %v2780_v12 }
 0xa99   : > { %v2793_v29 = vsel %vm2791_vm12, %v2792_v15, %v2790_v45 }
 0xa9a   : > { %v2801_v51 = vadd.f32 1e-06, %v2793_v29  ;;  %v2797_v58 = vsel %vm2796_vm13, %v2780_v12, %v2795_v53 }
 0xa9b   : > { %v2800_v48 = vsel %vm2798_vm14, %v2799_v18, %v2797_v58  ;;  %v3279_v18 = vld [vmem:[%s4460_s8] ss:$0 sm:$0xff] (!%p3278_p1) }
 0xa9c   : > { %3647 = vrcp.f32 %v2801_v51  ;;  %v2802_v33 = vadd.f32 1e-06, %v2800_v48 }
 0xa9e   : > { %3649 = vrcp.f32 %v2802_v33  ;;  %v3280_v33 = vld [vmem:[%s4460_s8 + $0x1] ss:$0 sm:$0xff] (!%p3278_p1) }
 0xaa6   : > { %v3648_v50 = vpop.eup %3647 }
 0xaa7   : > { %v2804_v62 = vmul.f32 %v3648_v50, %v2785_v19 }
 0xaa8   : > { %v3650_v4 = vpop.eup %3649 }
 0xaa9   : > { %v2806_v20 = vmul.f32 %v3650_v4, %v2786_v61  ;;  %v2811_v17 = vadd.f32 %v3267_v43, %v2804_v62 }
 0xaab   : > { %v2812_v21 = vadd.f32 %v3267_v43, %v2806_v20 }
 0xaad   : > { %v2813_v32 = vpack.c.bf16 %v2812_v21, %v2811_v17 }
 0xaaf   : > { %3476 = vmatmul.mubr.msk.bf16.vlgmr.msra.gmra.mrb[40].mxu0 %vm485_vm1, %v2813_v32 }
 0xb82   : > { %v2874_v34 = vpop.f32.mrb[40].mxu0 }
 0xb83   : > { %v2875_v37 = vadd.f32 %v3268_v25, %v2874_v34  ;;  %v3477_v26 = vpop.f32.mrb[41].mxu0 }
 0xb84   : > { %v2877_v30 = vpop.f32.mrb[42].mxu0 }
 0xb85   : > { %v2878_v31 = vadd.f32 %v3268_v25, %v2877_v30  ;;  %v3478_v35 = vpop.f32.mrb[43].mxu0  ;;  %v2881_v28 = vmax.f32 %v2875_v37, 0.0 }
 0xb87   : > { %v2882_v39 = vmax.f32 %v2878_v31, 0.0 }
 0xb89   : > { %v2883_v7 = vpack.c.bf16 %v2882_v39, %v2881_v28 }
 0xb8b   : > { %3488 = vmatmul.mubr.msk.bf16.vlgmr.msra.gmra.mrb[40].mxu1 %vm2920_vm15, %v2883_v7 }
 0xc5e   : > { %v2958_v27 = vpop.f32.mrb[40].mxu1 }
 0xc5f   : > { %v2959_v36 = vadd.f32 %v3272_v24, %v2958_v27  ;;  %v3489_v40 = vpop.f32.mrb[41].mxu1  ;;  %2972 = sbr.rel (%p3278_p1) target bundleno = 3502 (0xdae), region = 60 }
 0xc60   : > { %v2961_v38 = vpop.f32.mrb[42].mxu1 }
 0xc61   : > { %v2965_v42 = vadd.f32 %v2959_v36, %v4326_v41  ;;  %v2962_v44 = vadd.f32 %v3272_v24, %v2961_v38  ;;  %v3490_v47 = vpop.f32.mrb[43].mxu1 }
 0xc63   : > { %2967 = vst.msk [vmem:[#allocation2] sm:$0xff] %vm485_vm1, %v2965_v42  ;;  %v2966_v49 = vadd.f32 %v2962_v44, %v4329_v46  ;;  %v2975_v52 = vsel (!%p3278_p1), %vm485_vm1, %v2965_v42, 0.0 }
 0xc64   : > { %2976 = vadd.xlane.f32.xlu0 (!%p3278_p1), %v2975_v52 }
 0xc65   : > { %2968 = vst.msk [vmem:[#allocation2 + $0x8] sm:$0xff] %vm485_vm1, %v2966_v49  ;;  %v2978_v54 = vsel (!%p3278_p1), %vm485_vm1, %v2966_v49, 0.0 }
 0xc68   : > { %2979 = vadd.xlane.f32.xlu0 %v2978_v54 }
 0xcf1   : > { %v2977_v41 = vpop.xlane.xlu0 %2976 }
 0xcf2   : > { %v2981_v55 = vmul.f32 0.03125, %v2977_v41 }
 0xcf4   : > { %v2983_v8 = vsub.f32 %v2965_v42, %v2981_v55 }
 0xcf5   : > { %v2980_v59 = vpop.xlane.xlu0 %2979 }
 0xcf6   : > { %v2982_v60 = vmul.f32 0.03125, %v2980_v59  ;;  %v2985_v9 = vmul.f32 %v2983_v8, %v2983_v8  ;;  %v2999_v58 = vmul.f32 %v3279_v18, %v2983_v8 }
 0xcf8   : > { %v2984_v46 = vsub.f32 %v2966_v49, %v2982_v60  ;;  %v2987_v10 = vsel %vm485_vm1, %v2985_v9, 0.0 }
 0xcf9   : > { %2988 = vadd.xlane.f32.xlu1 %v2987_v10 }
 0xcfa   : > { %v2986_v0 = vmul.f32 %v2984_v46, %v2984_v46  ;;  %v3000_v50 = vmul.f32 %v3279_v18, %v2984_v46 }
 0xcfc   : > { %v2990_v56 = vsel %vm485_vm1, %v2986_v0, 0.0 }
 0xcfd   : > { %2991 = vadd.xlane.f32.xlu1 %v2990_v56 }
 0xd86   : > { %v2989_v1 = vpop.xlane.xlu1 %2988 }
 0xd87   : > { %v2993_v2 = vmul.f32 0.032258064, %v2989_v1 }
 0xd89   : > { %3651 = vrsqrt.f32 %v2993_v2  ;;  %vm3003_vm0 = vcmp.eq.f32.partialorder %v2993_v2, inf  ;;  %v3006_v11 = vand.u32 2147483648, %v2993_v2  ;;  %vm3005_vm2 = vcmp.eq.f32.partialorder %v2993_v2, 0.0 }
 0xd8a   : > { %v2992_v3 = vpop.xlane.xlu1 %2991 }
 0xd8b   : > { %v2994_v6 = vmul.f32 0.032258064, %v2992_v3 }
 0xd8d   : > { %3653 = vrsqrt.f32 %v2994_v6  ;;  %vm3010_vm3 = vcmp.eq.f32.partialorder %v2994_v6, inf  ;;  %v3013_v45 = vand.u32 2147483648, %v2994_v6  ;;  %vm3012_vm4 = vcmp.eq.f32.partialorder %v2994_v6, 0.0 }
 0xd93   : > { %v3652_v63 = vpop.eup %3651 }
 0xd94   : > { %v3002_v5 = vmul.f32 %v3652_v63, %v2993_v2 }
 0xd96   : > { %v3004_v12 = vsel %vm3003_vm0, %v2993_v2, %v3002_v5 }
 0xd97   : > { %v3654_v13 = vpop.eup %3653  ;;  %v3007_v14 = vsel %vm3005_vm2, %v3006_v11, %v3004_v12 }
 0xd98   : > { %v3015_v15 = vadd.f32 1e-06, %v3007_v14  ;;  %v3009_v16 = vmul.f32 %v3654_v13, %v2994_v6 }
 0xd9a   : > { %3655 = vrcp.f32 %v3015_v15  ;;  %v3011_v29 = vsel %vm3010_vm3, %v2994_v6, %v3009_v16 }
 0xd9b   : > { %v3014_v53 = vsel %vm3012_vm4, %v3013_v45, %v3011_v29 }
 0xd9c   : > { %v3016_v51 = vadd.f32 1e-06, %v3014_v53 }
 0xd9e   : > { %3657 = vrcp.f32 %v3016_v51 }
 0xda4   : > { %v3656_v48 = vpop.eup %3655 }
 0xda5   : > { %v3018_v57 = vmul.f32 %v3656_v48, %v2999_v58 }
 0xda7   : > { %v3025_v19 = vadd.f32 %v3280_v33, %v3018_v57 }
 0xda8   : > { %v3658_v61 = vpop.eup %3657 }
 0xda9   : > { %3027 = vst.msk [vmem:[%s4371_s28] sm:$0xff] %vm485_vm1, %v3025_v19  ;;  %v3020_v62 = vmul.f32 %v3658_v61, %v3000_v50 }
 0xdab   : > { %v3026_v4 = vadd.f32 %v3280_v33, %v3020_v62 }
 0xdad   : > { %3028 = vst.msk [vmem:[%s4371_s28 + $0x8] sm:$0xff] %vm485_vm1, %v3026_v4 }
 0xdae PF: > { %s3290_s29 = sshll.u32 %s3741_s13, 8  ;;  %s3043_s20 = sshll.u32 %s4371_s28, 4  ;;  %s4395_s20 = int_to_ptr.vmem [resolvable:$true] %s3043_s20 }
 0xdaf   : > { %s4392_s15 = scalar_lea.hbm %s4461_s9, %s3290_s29  ;;  %s4474_s23 = sand.u32 1, %s3729_s10  }
 0xdb0   : > { %s4399_s24 = scalar_lea.sflag [#allocation4], %s4474_s23  ;;  %s3659_s12 = scalar_lea.vmem %s4395_s20, 256 }
 0xdb1   : > { %p3660_p2 = scmp.ne.s32.totalorder %s4395_s20, %s3659_s12  ;;  %s3766_s13 = smov [#allocation3]  }
 0xdb2   : > { %s3663_s19 = sshll.u32 %s3766_s13, 4  ;;  %s3664_s19 = int_to_ptr.vmem [resolvable:$false] %s3663_s19 }
 0xdb3   : > { %p3661_p4 = pnand %p3660_p2, %p3867_p3  ;;  %s3665_s18 = scalar_lea.vmem %s3664_s19, 512 }
 0xdb4   : > { %p3666_p6 = scmp.lt.s32.totalorder %s4395_s20, %s3664_s19  ;;  %p3667_p7 = scmp.lt.s32.totalorder %s3665_s18, %s3659_s12 }
 0xdb5   : > { %p3662_p5 = pneg %p3661_p4 }
 0xdb6   : > { %p3668_p8 = por %p3667_p7, %p3666_p6 }
 0xdb8   : > { %p3669_p10 = pnand %p3668_p8, %p3662_p5 }
 0xdba   : > { %3672 = shalt.err (!%p3669_p10)
}
 0xdbb   : > { %s3673_s28 = scalar_lea.hbm %s4392_s15, 256  ;;  %s3677_s17 = scalar_lea.hbm %s4461_s9, 512 }
 0xdbc   : > { %p3674_p11 = scmp.ne.s32.totalorder %s4392_s15, %s3673_s28  ;;  %p3678_p0 = scmp.lt.u32.totalorder %s4392_s15, %s4461_s9 }
 0xdbd   : > { %p3679_p1 = scmp.lt.u32.totalorder %s3677_s17, %s3673_s28  ;;  %p3681_p4 = scmp.lt.u32.totalorder %s3673_s28, %s4392_s15 }
 0xdbe   : > { %p3675_p12 = pnand %p3674_p11, %p3867_p3 }
 0xdbf   : > { %p3680_p2 = por %p3679_p1, %p3678_p0 }
 0xdc0   : > { %p3676_p13 = pneg %p3675_p12 }
 0xdc1   : > { %p3682_p5 = por %p3681_p4, %p3680_p2 }
 0xdc3   : > { %p3683_p6 = pnand %p3682_p5, %p3676_p13 }
 0xdc5   : > { %3686 = shalt.err (!%p3683_p6)
}
 0xdc6   : > { %s3767_s12 = smov 128  }
 0xdc7   : > { %3491 = dma.vmem_to_hbm [thread:$0]  (%p3867_p3), %s4395_s20, 256, %s4392_s15, %s4399_s24, %s3767_s12, %s3767_s12, %s3764_s26  }
 0xdc8 PF: > { %p3497_p7 = scmp.ge.s32.totalorder %s3753_s16, 2  ;;  %s3058_s13 = sand.u32 1, %s3725_s30  }
 0xdc9   : > { %s3059_s19 = scalar_lea.sflag [#allocation4], %s3058_s13 }
 0xdca   : > { %p3494_p8 = pnand %p3497_p7, %p3877_p9 }
 0xdcc   : > { %3720 = dma.done.wait (!%p3494_p8), %s3059_s19, 256  }
 0xdcd   : > { %3722 = vsyncadd (!%p3494_p8), %s3059_s19, 4294967040  ;;  %s22_s16 = sadd.s32 1, %s3753_s16   ;;  %s4475_s12 = sld [smem:[#allocation6_spill]] }
 0xdce   : > { %p19_p10 = scmp.ge.s32.totalorder %s22_s16, 6   ;;  %s4476_s13 = sld [smem:[#allocation7_spill]] }
 0xdcf   : > { %s4477_s14 = sld [smem:[#allocation8_spill]]  ;;  %s4478_s15 = sld [smem:[#allocation9_spill]] }
 0xdd0   : > { %s4479_s30 = smov %s3729_s10  ;;  %s4480_s10 = smov %s3733_s11 }
 0xdd1   : > { %s4481_s11 = smov %s3885_s25  ;;  %21 = sbr.rel (!%p19_p10) target bundleno = 5 (0x5), region = 117 }
 0xdd8   :  { %3064 = vsyncpa [#allocation4], 1 }
 0xdd9   :  { %3066 = vsyncpa [#allocation4 + $0x1], 1 }

</bundles_post_ra>
